<compile_context>
chip_gen: v5e
topology: v5e:2x2
jax: 0.10.0
libtpu: 0.0.40
codegen_flags: <defaults>
</compile_context>

<pallas_src>
import functools

import jax
import jax.numpy as jnp
import numpy as np
from jax import lax
from jax.experimental import pallas as pl
from jax.experimental.pallas import tpu as pltpu

# PyTorch forward splits the 64-dim output into 5 one-hot groups and softmaxes
# each independently (dim=1): 15 + 15 + 4 + 15 + 15 = 64.
SEGMENTS = ((0, 15), (15, 30), (30, 34), (34, 49), (49, 64))
ACTION_SIZE = 10                       # env.actions -> last 10 entries of the input
STATE_SIZE = 64                        # env.getStateRep(oneHotOutput=True)
INPUT_SIZE = ACTION_SIZE + STATE_SIZE  # 74


def _round_up(n, m):
    return ((n + m - 1) // m) * m


def _ffann_kernel(x_ref, w1_ref, b1_ref, w2_ref, b2_ref, w3_ref, b3_ref, o_ref):
    # bf16 cast in-kernel (VPU) — no wrapper-side pad/cast HBM pass over x.
    # Three MXU matmuls with f32 accumulation; bias-add/ReLU/softmax stay f32.
    x = x_ref[...].astype(jnp.bfloat16)                               # (tb, 74)
    h1 = jnp.dot(x, w1_ref[...], preferred_element_type=jnp.float32)
    h1 = jnp.maximum(h1 + b1_ref[...], 0.0)
    h2 = jnp.dot(h1.astype(jnp.bfloat16), w2_ref[...],
                 preferred_element_type=jnp.float32)
    h2 = jnp.maximum(h2 + b2_ref[...], 0.0)
    out = jnp.dot(h2.astype(jnp.bfloat16), w3_ref[...],
                  preferred_element_type=jnp.float32) + b3_ref[...]   # (tb, 64) f32

    # Segmented softmax along dim=1 with a SINGLE exp pass: per-column
    # segment-max / segment-denominator maps built with where-masks, then one
    # exact division so every group sums to 1 at f32 precision.
    # TODO(synk): if the kernel ever stops being HBM-bound, move the 5 masked
    # sums / where-broadcasts onto the MXU via a constant 64x5 segment-
    # membership matmul (perf-review item); not the binding unit today.
    col = lax.broadcasted_iota(jnp.int32, out.shape, 1)
    colmax = jnp.zeros_like(out)
    for lo, hi in SEGMENTS:
        mask = (col >= lo) & (col < hi)
        m = jnp.max(jnp.where(mask, out, -jnp.inf), axis=1, keepdims=True)
        colmax = jnp.where(mask, m, colmax)
    e = jnp.exp(out - colmax)                       # one EUP pass over the tile
    denom = jnp.ones_like(out)
    for lo, hi in SEGMENTS:
        mask = (col >= lo) & (col < hi)
        s = jnp.sum(jnp.where(mask, e, 0.0), axis=1, keepdims=True)
        denom = jnp.where(mask, s, denom)
    o_ref[...] = e / denom


def _pick_tile(batch, tile_b):
    """Batch-tile selection with the review's guards."""
    tile_b = max(8, min(int(tile_b), 2048))    # 2048 keeps v5e's 16 MiB scoped VMEM safe
    tile_b = min(tile_b, _round_up(batch, 8))  # never exceed the (rounded) batch
    if batch > 8:
        # Keep >= 2 grid steps: v7x megacore sharding + DMA/compute overlap.
        tile_b = min(tile_b, _round_up((batch + 1) // 2, 8))
    return _round_up(tile_b, 8)


def prepare_params(params):
    """One-time weight prep: bf16 weights for the MXU path, f32 (1, dim) biases.

    Call this OUTSIDE the per-forward path so no cast/pad XLA ops run per call.
    """
    w1, b1, w2, b2, w3, b3 = params
    as_bias = lambda b: jnp.asarray(b, jnp.float32).reshape(1, -1)
    return (jnp.asarray(w1, jnp.bfloat16), as_bias(b1),
            jnp.asarray(w2, jnp.bfloat16), as_bias(b2),
            jnp.asarray(w3, jnp.bfloat16), as_bias(b3))


@functools.partial(jax.jit, static_argnames=("tile_b",))
def forward_model_ffann(x, params, tile_b=1024):
    """Pallas forward pass of ForwardModelFFANN. x: (B, 74) f32 -> (B, 64) f32."""
    w1, b1, w2, b2, w3, b3 = params
    # No-ops when params came from prepare_params(); safety net otherwise.
    w1 = w1.astype(jnp.bfloat16)
    w2 = w2.astype(jnp.bfloat16)
    w3 = w3.astype(jnp.bfloat16)
    b1 = b1.astype(jnp.float32).reshape(1, -1)
    b2 = b2.astype(jnp.float32).reshape(1, -1)
    b3 = b3.astype(jnp.float32).reshape(1, -1)
    h1_dim, h2_dim = w1.shape[1], w2.shape[1]

    batch = x.shape[0]
    tb = _pick_tile(batch, tile_b)
    b_pad = _round_up(batch, tb)
    if b_pad != batch:
        # Rows-only zero pad (no lane pad, no dtype cast) — cheap and rare.
        x = jnp.pad(x, ((0, b_pad - batch), (0, 0)))

    resident = lambda i: (0, 0)  # weights/biases: DMA'd once, stay VMEM-resident
    out = pl.pallas_call(
        _ffann_kernel,
        out_shape=jax.ShapeDtypeStruct((b_pad, STATE_SIZE), jnp.float32),
        grid=(b_pad // tb,),
        in_specs=[
            pl.BlockSpec((tb, INPUT_SIZE), lambda i: (i, 0)),   # x: streamed raw f32
            pl.BlockSpec((INPUT_SIZE, h1_dim), resident),        # w1 (bf16)
            pl.BlockSpec((1, h1_dim), resident),                 # b1 (f32)
            pl.BlockSpec((h1_dim, h2_dim), resident),            # w2 (bf16)
            pl.BlockSpec((1, h2_dim), resident),                 # b2 (f32)
            pl.BlockSpec((h2_dim, STATE_SIZE), resident),        # w3 (bf16)
            pl.BlockSpec((1, STATE_SIZE), resident),             # b3 (f32)
        ],
        out_specs=pl.BlockSpec((tb, STATE_SIZE), lambda i: (i, 0)),
        compiler_params=pltpu.CompilerParams(
            # Batch blocks are independent -> shard across TensorCores on v7x.
            dimension_semantics=("parallel",),
        ),
    )(x, w1, b1, w2, b2, w3, b3)
    return out if b_pad == batch else out[:batch]


def init_params(key, layer_sizes=(256, 128)):
    """Deterministic nn.Linear-style init (uniform +/- 1/sqrt(fan_in)), f32."""
    h1, h2 = layer_sizes
    keys = jax.random.split(key, 6)

    def linear(kw, kb, fan_in, fan_out):
        bound = 1.0 / float(np.sqrt(fan_in))
        w = jax.random.uniform(kw, (fan_in, fan_out), jnp.float32, -bound, bound)
        b = jax.random.uniform(kb, (1, fan_out), jnp.float32, -bound, bound)
        return w, b

    w1, b1 = linear(keys[0], keys[1], INPUT_SIZE, h1)
    w2, b2 = linear(keys[2], keys[3], h1, h2)
    w3, b3 = linear(keys[4], keys[5], h2, STATE_SIZE)
    return w1, b1, w2, b2, w3, b3


def forward_reference(x, params):
    """Pure-JAX f32 reference for correctness checking."""
    w1, b1, w2, b2, w3, b3 = params
    h1 = jax.nn.relu(x @ w1 + b1)
    h2 = jax.nn.relu(h1 @ w2 + b2)
    out = h2 @ w3 + b3
    parts = [jax.nn.softmax(out[:, lo:hi], axis=1) for lo, hi in SEGMENTS]
    return jnp.concatenate(parts, axis=1)


# TODO(synk): noisify/train/test/largeTest/print*/accuracy helpers are host-side
# training utilities (numpy RNG, Adam optimizer, file I/O, env pretty-printing)
# with no kernel equivalent; only the forward pass is ported.

if __name__ == "__main__":
    key = jax.random.PRNGKey(0)
    k_param, k_x = jax.random.split(key)

    # Hidden sizes kept small but lane-aligned ([256, 128] stand-in for [800, 600]);
    # batch of 256 -> tile 128 -> a 2-step pipelined grid (both v7x cores busy).
    raw_params = init_params(k_param, layer_sizes=(256, 128))
    fwd_params = prepare_params(raw_params)   # one-time bf16 cast, outside per-call path

    batch = 256
    x = jax.random.normal(k_x, (batch, INPUT_SIZE), dtype=jnp.float32)

    y = jax.block_until_ready(forward_model_ffann(x, fwd_params))
    y_ref = jax.block_until_ready(forward_reference(x, raw_params))

    assert y.shape == (batch, STATE_SIZE)
    # bf16 matmul inputs (f32 accumulation) -> loosened tolerance vs f32 reference.
    np.testing.assert_allclose(np.asarray(y), np.asarray(y_ref), rtol=2e-2, atol=2e-2)
    # Each of the 5 softmax groups sums to 1 (exact f32 division) -> rows sum to 5.
    np.testing.assert_allclose(np.asarray(y).sum(axis=1), 5.0, rtol=1e-4)

    print("KERNEL_OK")
</pallas_src>

<mosaic_0001>
module attributes {stable_mosaic.version = 11 : i64} {
  func.func @_ffann_kernel(%arg0: i32, %arg1: memref<128x74xf32, #tpu.memory_space<vmem>>, %arg2: memref<74x256xbf16, #tpu.memory_space<vmem>>, %arg3: memref<1x256xf32, #tpu.memory_space<vmem>>, %arg4: memref<256x128xbf16, #tpu.memory_space<vmem>>, %arg5: memref<1x128xf32, #tpu.memory_space<vmem>>, %arg6: memref<128x64xbf16, #tpu.memory_space<vmem>>, %arg7: memref<1x64xf32, #tpu.memory_space<vmem>>, %arg8: memref<128x64xf32, #tpu.memory_space<vmem>>) attributes {dimension_semantics = [#tpu.dimension_semantics<parallel>], iteration_bounds = array<i64: 2>, scalar_prefetch = 0 : i64, scratch_operands = 0 : i64, tpu.core_type = #tpu.core_type<tc>, window_params = [{transform_indices = @transform_0, window_bounds = array<i64: 128, 74>}, {pipeline_mode = #tpu.pipeline_mode<synchronous>, transform_indices = @transform_1, window_bounds = array<i64: 74, 256>}, {pipeline_mode = #tpu.pipeline_mode<synchronous>, transform_indices = @transform_2, window_bounds = array<i64: 1, 256>}, {pipeline_mode = #tpu.pipeline_mode<synchronous>, transform_indices = @transform_3, window_bounds = array<i64: 256, 128>}, {pipeline_mode = #tpu.pipeline_mode<synchronous>, transform_indices = @transform_4, window_bounds = array<i64: 1, 128>}, {pipeline_mode = #tpu.pipeline_mode<synchronous>, transform_indices = @transform_5, window_bounds = array<i64: 128, 64>}, {pipeline_mode = #tpu.pipeline_mode<synchronous>, transform_indices = @transform_6, window_bounds = array<i64: 1, 64>}, {transform_indices = @transform_7, window_bounds = array<i64: 128, 64>}]} {
    %c0 = arith.constant 0 : index
    %c0_0 = arith.constant 0 : index
    %0 = vector.load %arg1[%c0, %c0_0] : memref<128x74xf32, #tpu.memory_space<vmem>>, vector<128x74xf32>
    %1 = arith.truncf %0 : vector<128x74xf32> to vector<128x74xbf16>
    %c0_1 = arith.constant 0 : index
    %c0_2 = arith.constant 0 : index
    %2 = vector.load %arg2[%c0_1, %c0_2] : memref<74x256xbf16, #tpu.memory_space<vmem>>, vector<74x256xbf16>
    %cst = arith.constant dense<0.000000e+00> : vector<128x256xf32>
    %3 = tpu.matmul %1, %2, %cst {dimension_numbers = #tpu.dot_dimension_numbers<[1], [0], [0], [1], [0, 0, 1, 1], [], []>} : vector<128x74xbf16>, vector<74x256xbf16>, vector<128x256xf32> -> vector<128x256xf32>
    %c0_3 = arith.constant 0 : index
    %c0_4 = arith.constant 0 : index
    %4 = vector.load %arg3[%c0_3, %c0_4] : memref<1x256xf32, #tpu.memory_space<vmem>>, vector<1x256xf32>
    %5 = vector.broadcast %4 : vector<1x256xf32> to vector<128x256xf32>
    %6 = arith.addf %3, %5 : vector<128x256xf32>
    %cst_5 = arith.constant 0.000000e+00 : f32
    %7 = vector.broadcast %cst_5 : f32 to vector<128x256xf32>
    %8 = arith.maximumf %6, %7 : vector<128x256xf32>
    %9 = arith.truncf %8 : vector<128x256xf32> to vector<128x256xbf16>
    %c0_6 = arith.constant 0 : index
    %c0_7 = arith.constant 0 : index
    %10 = vector.load %arg4[%c0_6, %c0_7] : memref<256x128xbf16, #tpu.memory_space<vmem>>, vector<256x128xbf16>
    %cst_8 = arith.constant dense<0.000000e+00> : vector<128x128xf32>
    %11 = tpu.matmul %9, %10, %cst_8 {dimension_numbers = #tpu.dot_dimension_numbers<[1], [0], [0], [1], [0, 0, 1, 1], [], []>} : vector<128x256xbf16>, vector<256x128xbf16>, vector<128x128xf32> -> vector<128x128xf32>
    %c0_9 = arith.constant 0 : index
    %c0_10 = arith.constant 0 : index
    %12 = vector.load %arg5[%c0_9, %c0_10] : memref<1x128xf32, #tpu.memory_space<vmem>>, vector<1x128xf32>
    %13 = vector.broadcast %12 : vector<1x128xf32> to vector<128x128xf32>
    %14 = arith.addf %11, %13 : vector<128x128xf32>
    %cst_11 = arith.constant 0.000000e+00 : f32
    %15 = vector.broadcast %cst_11 : f32 to vector<128x128xf32>
    %16 = arith.maximumf %14, %15 : vector<128x128xf32>
    %17 = arith.truncf %16 : vector<128x128xf32> to vector<128x128xbf16>
    %c0_12 = arith.constant 0 : index
    %c0_13 = arith.constant 0 : index
    %18 = vector.load %arg6[%c0_12, %c0_13] : memref<128x64xbf16, #tpu.memory_space<vmem>>, vector<128x64xbf16>
    %cst_14 = arith.constant dense<0.000000e+00> : vector<128x64xf32>
    %19 = tpu.matmul %17, %18, %cst_14 {dimension_numbers = #tpu.dot_dimension_numbers<[1], [0], [0], [1], [0, 0, 1, 1], [], []>} : vector<128x128xbf16>, vector<128x64xbf16>, vector<128x64xf32> -> vector<128x64xf32>
    %c0_15 = arith.constant 0 : index
    %c0_16 = arith.constant 0 : index
    %20 = vector.load %arg7[%c0_15, %c0_16] : memref<1x64xf32, #tpu.memory_space<vmem>>, vector<1x64xf32>
    %21 = vector.broadcast %20 : vector<1x64xf32> to vector<128x64xf32>
    %22 = arith.addf %19, %21 : vector<128x64xf32>
    %23 = tpu.iota {dimensions = array<i32: 1>} : vector<128x64xi32>
    %cst_17 = arith.constant 0.000000e+00 : f32
    %24 = vector.broadcast %cst_17 : f32 to vector<128x64xf32>
    %c0_i32 = arith.constant 0 : i32
    %25 = vector.broadcast %c0_i32 : i32 to vector<128x64xi32>
    %26 = arith.cmpi sge, %23, %25 : vector<128x64xi32>
    %c15_i32 = arith.constant 15 : i32
    %27 = vector.broadcast %c15_i32 : i32 to vector<128x64xi32>
    %28 = arith.cmpi slt, %23, %27 : vector<128x64xi32>
    %29 = arith.andi %26, %28 : vector<128x64xi1>
    %cst_18 = arith.constant 0xFF800000 : f32
    %30 = vector.broadcast %cst_18 : f32 to vector<128x64xf32>
    %31 = arith.select %29, %22, %30 : vector<128x64xi1>, vector<128x64xf32>
    %cst_19 = arith.constant dense<0xFF800000> : vector<128xf32>
    %32 = vector.multi_reduction <maximumf>, %31, %cst_19 [1] : vector<128x64xf32> to vector<128xf32>
    %33 = vector.shape_cast %32 : vector<128xf32> to vector<128x1xf32>
    %34 = vector.shape_cast %33 : vector<128x1xf32> to vector<128x1xf32>
    %35 = vector.broadcast %34 : vector<128x1xf32> to vector<128x64xf32>
    %36 = arith.select %29, %35, %24 : vector<128x64xi1>, vector<128x64xf32>
    %c15_i32_20 = arith.constant 15 : i32
    %37 = vector.broadcast %c15_i32_20 : i32 to vector<128x64xi32>
    %38 = arith.cmpi sge, %23, %37 : vector<128x64xi32>
    %c30_i32 = arith.constant 30 : i32
    %39 = vector.broadcast %c30_i32 : i32 to vector<128x64xi32>
    %40 = arith.cmpi slt, %23, %39 : vector<128x64xi32>
    %41 = arith.andi %38, %40 : vector<128x64xi1>
    %cst_21 = arith.constant 0xFF800000 : f32
    %42 = vector.broadcast %cst_21 : f32 to vector<128x64xf32>
    %43 = arith.select %41, %22, %42 : vector<128x64xi1>, vector<128x64xf32>
    %cst_22 = arith.constant dense<0xFF800000> : vector<128xf32>
    %44 = vector.multi_reduction <maximumf>, %43, %cst_22 [1] : vector<128x64xf32> to vector<128xf32>
    %45 = vector.shape_cast %44 : vector<128xf32> to vector<128x1xf32>
    %46 = vector.shape_cast %45 : vector<128x1xf32> to vector<128x1xf32>
    %47 = vector.broadcast %46 : vector<128x1xf32> to vector<128x64xf32>
    %48 = arith.select %41, %47, %36 : vector<128x64xi1>, vector<128x64xf32>
    %c30_i32_23 = arith.constant 30 : i32
    %49 = vector.broadcast %c30_i32_23 : i32 to vector<128x64xi32>
    %50 = arith.cmpi sge, %23, %49 : vector<128x64xi32>
    %c34_i32 = arith.constant 34 : i32
    %51 = vector.broadcast %c34_i32 : i32 to vector<128x64xi32>
    %52 = arith.cmpi slt, %23, %51 : vector<128x64xi32>
    %53 = arith.andi %50, %52 : vector<128x64xi1>
    %cst_24 = arith.constant 0xFF800000 : f32
    %54 = vector.broadcast %cst_24 : f32 to vector<128x64xf32>
    %55 = arith.select %53, %22, %54 : vector<128x64xi1>, vector<128x64xf32>
    %cst_25 = arith.constant dense<0xFF800000> : vector<128xf32>
    %56 = vector.multi_reduction <maximumf>, %55, %cst_25 [1] : vector<128x64xf32> to vector<128xf32>
    %57 = vector.shape_cast %56 : vector<128xf32> to vector<128x1xf32>
    %58 = vector.shape_cast %57 : vector<128x1xf32> to vector<128x1xf32>
    %59 = vector.broadcast %58 : vector<128x1xf32> to vector<128x64xf32>
    %60 = arith.select %53, %59, %48 : vector<128x64xi1>, vector<128x64xf32>
    %c34_i32_26 = arith.constant 34 : i32
    %61 = vector.broadcast %c34_i32_26 : i32 to vector<128x64xi32>
    %62 = arith.cmpi sge, %23, %61 : vector<128x64xi32>
    %c49_i32 = arith.constant 49 : i32
    %63 = vector.broadcast %c49_i32 : i32 to vector<128x64xi32>
    %64 = arith.cmpi slt, %23, %63 : vector<128x64xi32>
    %65 = arith.andi %62, %64 : vector<128x64xi1>
    %cst_27 = arith.constant 0xFF800000 : f32
    %66 = vector.broadcast %cst_27 : f32 to vector<128x64xf32>
    %67 = arith.select %65, %22, %66 : vector<128x64xi1>, vector<128x64xf32>
    %cst_28 = arith.constant dense<0xFF800000> : vector<128xf32>
    %68 = vector.multi_reduction <maximumf>, %67, %cst_28 [1] : vector<128x64xf32> to vector<128xf32>
    %69 = vector.shape_cast %68 : vector<128xf32> to vector<128x1xf32>
    %70 = vector.shape_cast %69 : vector<128x1xf32> to vector<128x1xf32>
    %71 = vector.broadcast %70 : vector<128x1xf32> to vector<128x64xf32>
    %72 = arith.select %65, %71, %60 : vector<128x64xi1>, vector<128x64xf32>
    %c49_i32_29 = arith.constant 49 : i32
    %73 = vector.broadcast %c49_i32_29 : i32 to vector<128x64xi32>
    %74 = arith.cmpi sge, %23, %73 : vector<128x64xi32>
    %c64_i32 = arith.constant 64 : i32
    %75 = vector.broadcast %c64_i32 : i32 to vector<128x64xi32>
    %76 = arith.cmpi slt, %23, %75 : vector<128x64xi32>
    %77 = arith.andi %74, %76 : vector<128x64xi1>
    %cst_30 = arith.constant 0xFF800000 : f32
    %78 = vector.broadcast %cst_30 : f32 to vector<128x64xf32>
    %79 = arith.select %77, %22, %78 : vector<128x64xi1>, vector<128x64xf32>
    %cst_31 = arith.constant dense<0xFF800000> : vector<128xf32>
    %80 = vector.multi_reduction <maximumf>, %79, %cst_31 [1] : vector<128x64xf32> to vector<128xf32>
    %81 = vector.shape_cast %80 : vector<128xf32> to vector<128x1xf32>
    %82 = vector.shape_cast %81 : vector<128x1xf32> to vector<128x1xf32>
    %83 = vector.broadcast %82 : vector<128x1xf32> to vector<128x64xf32>
    %84 = arith.select %77, %83, %72 : vector<128x64xi1>, vector<128x64xf32>
    %85 = arith.subf %22, %84 : vector<128x64xf32>
    %86 = math.exp %85 : vector<128x64xf32>
    %cst_32 = arith.constant 1.000000e+00 : f32
    %87 = vector.broadcast %cst_32 : f32 to vector<128x64xf32>
    %c0_i32_33 = arith.constant 0 : i32
    %88 = vector.broadcast %c0_i32_33 : i32 to vector<128x64xi32>
    %89 = arith.cmpi sge, %23, %88 : vector<128x64xi32>
    %c15_i32_34 = arith.constant 15 : i32
    %90 = vector.broadcast %c15_i32_34 : i32 to vector<128x64xi32>
    %91 = arith.cmpi slt, %23, %90 : vector<128x64xi32>
    %92 = arith.andi %89, %91 : vector<128x64xi1>
    %cst_35 = arith.constant 0.000000e+00 : f32
    %93 = vector.broadcast %cst_35 : f32 to vector<128x64xf32>
    %94 = arith.select %92, %86, %93 : vector<128x64xi1>, vector<128x64xf32>
    %cst_36 = arith.constant dense<0.000000e+00> : vector<128xf32>
    %95 = vector.multi_reduction <add>, %94, %cst_36 [1] : vector<128x64xf32> to vector<128xf32>
    %96 = vector.shape_cast %95 : vector<128xf32> to vector<128x1xf32>
    %97 = vector.shape_cast %96 : vector<128x1xf32> to vector<128x1xf32>
    %98 = vector.broadcast %97 : vector<128x1xf32> to vector<128x64xf32>
    %99 = arith.select %92, %98, %87 : vector<128x64xi1>, vector<128x64xf32>
    %c15_i32_37 = arith.constant 15 : i32
    %100 = vector.broadcast %c15_i32_37 : i32 to vector<128x64xi32>
    %101 = arith.cmpi sge, %23, %100 : vector<128x64xi32>
    %c30_i32_38 = arith.constant 30 : i32
    %102 = vector.broadcast %c30_i32_38 : i32 to vector<128x64xi32>
    %103 = arith.cmpi slt, %23, %102 : vector<128x64xi32>
    %104 = arith.andi %101, %103 : vector<128x64xi1>
    %cst_39 = arith.constant 0.000000e+00 : f32
    %105 = vector.broadcast %cst_39 : f32 to vector<128x64xf32>
    %106 = arith.select %104, %86, %105 : vector<128x64xi1>, vector<128x64xf32>
    %cst_40 = arith.constant dense<0.000000e+00> : vector<128xf32>
    %107 = vector.multi_reduction <add>, %106, %cst_40 [1] : vector<128x64xf32> to vector<128xf32>
    %108 = vector.shape_cast %107 : vector<128xf32> to vector<128x1xf32>
    %109 = vector.shape_cast %108 : vector<128x1xf32> to vector<128x1xf32>
    %110 = vector.broadcast %109 : vector<128x1xf32> to vector<128x64xf32>
    %111 = arith.select %104, %110, %99 : vector<128x64xi1>, vector<128x64xf32>
    %c30_i32_41 = arith.constant 30 : i32
    %112 = vector.broadcast %c30_i32_41 : i32 to vector<128x64xi32>
    %113 = arith.cmpi sge, %23, %112 : vector<128x64xi32>
    %c34_i32_42 = arith.constant 34 : i32
    %114 = vector.broadcast %c34_i32_42 : i32 to vector<128x64xi32>
    %115 = arith.cmpi slt, %23, %114 : vector<128x64xi32>
    %116 = arith.andi %113, %115 : vector<128x64xi1>
    %cst_43 = arith.constant 0.000000e+00 : f32
    %117 = vector.broadcast %cst_43 : f32 to vector<128x64xf32>
    %118 = arith.select %116, %86, %117 : vector<128x64xi1>, vector<128x64xf32>
    %cst_44 = arith.constant dense<0.000000e+00> : vector<128xf32>
    %119 = vector.multi_reduction <add>, %118, %cst_44 [1] : vector<128x64xf32> to vector<128xf32>
    %120 = vector.shape_cast %119 : vector<128xf32> to vector<128x1xf32>
    %121 = vector.shape_cast %120 : vector<128x1xf32> to vector<128x1xf32>
    %122 = vector.broadcast %121 : vector<128x1xf32> to vector<128x64xf32>
    %123 = arith.select %116, %122, %111 : vector<128x64xi1>, vector<128x64xf32>
    %c34_i32_45 = arith.constant 34 : i32
    %124 = vector.broadcast %c34_i32_45 : i32 to vector<128x64xi32>
    %125 = arith.cmpi sge, %23, %124 : vector<128x64xi32>
    %c49_i32_46 = arith.constant 49 : i32
    %126 = vector.broadcast %c49_i32_46 : i32 to vector<128x64xi32>
    %127 = arith.cmpi slt, %23, %126 : vector<128x64xi32>
    %128 = arith.andi %125, %127 : vector<128x64xi1>
    %cst_47 = arith.constant 0.000000e+00 : f32
    %129 = vector.broadcast %cst_47 : f32 to vector<128x64xf32>
    %130 = arith.select %128, %86, %129 : vector<128x64xi1>, vector<128x64xf32>
    %cst_48 = arith.constant dense<0.000000e+00> : vector<128xf32>
    %131 = vector.multi_reduction <add>, %130, %cst_48 [1] : vector<128x64xf32> to vector<128xf32>
    %132 = vector.shape_cast %131 : vector<128xf32> to vector<128x1xf32>
    %133 = vector.shape_cast %132 : vector<128x1xf32> to vector<128x1xf32>
    %134 = vector.broadcast %133 : vector<128x1xf32> to vector<128x64xf32>
    %135 = arith.select %128, %134, %123 : vector<128x64xi1>, vector<128x64xf32>
    %c49_i32_49 = arith.constant 49 : i32
    %136 = vector.broadcast %c49_i32_49 : i32 to vector<128x64xi32>
    %137 = arith.cmpi sge, %23, %136 : vector<128x64xi32>
    %c64_i32_50 = arith.constant 64 : i32
    %138 = vector.broadcast %c64_i32_50 : i32 to vector<128x64xi32>
    %139 = arith.cmpi slt, %23, %138 : vector<128x64xi32>
    %140 = arith.andi %137, %139 : vector<128x64xi1>
    %cst_51 = arith.constant 0.000000e+00 : f32
    %141 = vector.broadcast %cst_51 : f32 to vector<128x64xf32>
    %142 = arith.select %140, %86, %141 : vector<128x64xi1>, vector<128x64xf32>
    %cst_52 = arith.constant dense<0.000000e+00> : vector<128xf32>
    %143 = vector.multi_reduction <add>, %142, %cst_52 [1] : vector<128x64xf32> to vector<128xf32>
    %144 = vector.shape_cast %143 : vector<128xf32> to vector<128x1xf32>
    %145 = vector.shape_cast %144 : vector<128x1xf32> to vector<128x1xf32>
    %146 = vector.broadcast %145 : vector<128x1xf32> to vector<128x64xf32>
    %147 = arith.select %140, %146, %135 : vector<128x64xi1>, vector<128x64xf32>
    %148 = arith.divf %86, %147 : vector<128x64xf32>
    %c0_53 = arith.constant 0 : index
    %c0_54 = arith.constant 0 : index
    %149 = vector.load %arg8[%c0_53, %c0_54] : memref<128x64xf32, #tpu.memory_space<vmem>>, vector<128x64xf32>
    tpu.vector_store %arg8[%c0_53, %c0_54], %148 {strides = array<i32>} : memref<128x64xf32, #tpu.memory_space<vmem>>, vector<128x64xf32>,
    return
  }
  func.func @transform_0(%arg0: i32) -> (i32, i32) {
    %c0_i32 = arith.constant 0 : i32
    %c0_i32_0 = arith.constant 0 : i32
    return %arg0, %c0_i32 : i32, i32
  }
  func.func @transform_1(%arg0: i32) -> (i32, i32) {
    %c0_i32 = arith.constant 0 : i32
    %c0_i32_0 = arith.constant 0 : i32
    %c0_i32_1 = arith.constant 0 : i32
    return %c0_i32, %c0_i32_0 : i32, i32
  }
  func.func @transform_2(%arg0: i32) -> (i32, i32) {
    %c0_i32 = arith.constant 0 : i32
    %c0_i32_0 = arith.constant 0 : i32
    %c0_i32_1 = arith.constant 0 : i32
    return %c0_i32, %c0_i32_0 : i32, i32
  }
  func.func @transform_3(%arg0: i32) -> (i32, i32) {
    %c0_i32 = arith.constant 0 : i32
    %c0_i32_0 = arith.constant 0 : i32
    %c0_i32_1 = arith.constant 0 : i32
    return %c0_i32, %c0_i32_0 : i32, i32
  }
  func.func @transform_4(%arg0: i32) -> (i32, i32) {
    %c0_i32 = arith.constant 0 : i32
    %c0_i32_0 = arith.constant 0 : i32
    %c0_i32_1 = arith.constant 0 : i32
    return %c0_i32, %c0_i32_0 : i32, i32
  }
  func.func @transform_5(%arg0: i32) -> (i32, i32) {
    %c0_i32 = arith.constant 0 : i32
    %c0_i32_0 = arith.constant 0 : i32
    %c0_i32_1 = arith.constant 0 : i32
    return %c0_i32, %c0_i32_0 : i32, i32
  }
  func.func @transform_6(%arg0: i32) -> (i32, i32) {
    %c0_i32 = arith.constant 0 : i32
    %c0_i32_0 = arith.constant 0 : i32
    %c0_i32_1 = arith.constant 0 : i32
    return %c0_i32, %c0_i32_0 : i32, i32
  }
  func.func @transform_7(%arg0: i32) -> (i32, i32) {
    %c0_i32 = arith.constant 0 : i32
    %c0_i32_0 = arith.constant 0 : i32
    return %arg0, %c0_i32 : i32, i32
  }
}

</mosaic_0001>

<bundles_post_ra>
// kernel: forward_model_ffann.1
= control target key start
LH: loop header
LB: loop body
LE: loop exit
PB: predicated region body
PF: predicated region fallthrough
CT: control target
= control target key end

     0   :  { %s2432_s24 = smov 0   ;;  %s3930_s0 = inlined_call_operand.vmem [shape: f32[256,74], index: 0, kind: input, shape index: {}]   ;;  %s3931_s1 = inlined_call_operand.vmem [shape: bf16[74,256], index: 1, kind: input, shape index: {}]   ;;  %s3932_s2 = inlined_call_operand.vmem [shape: f32[1,256], index: 2, kind: input, shape index: {}]   ;;  %s3933_s3 = inlined_call_operand.vmem [shape: bf16[256,128], index: 3, kind: input, shape index: {}]   ;;  %s3934_s4 = inlined_call_operand.vmem [shape: f32[1,128], index: 4, kind: input, shape index: {}]   ;;  %s3935_s5 = inlined_call_operand.vmem [shape: bf16[128,64], index: 5, kind: input, shape index: {}]   ;;  %s3936_s6 = inlined_call_operand.vmem [shape: f32[1,64], index: 6, kind: input, shape index: {}]   ;;  %s3937_s7 = inlined_call_operand.vmem [shape: f32[256,64], index: 7, kind: output, shape index: {}]  }
   0x1 LB: > { %s2098_s25 = sadd.s32 4294967295, %s2390_s24   ;;  %p2102_p0 = scmp.ge.s32.totalorder %s2390_s24, 1  ;;  %s2390_s24 = sphi %s2432_s24, %s17_s24  }
   0x2   : > { %p238_p1 = scmp.lt.s32.totalorder %s2390_s24, 3 }
   0x4   : > { %p239_p2 = pnand %p2102_p0, %p238_p1 }
   0x5   : > { %s2103_s30 = sshll.u32 (!%p239_p2), %s2098_s25, 4 }
   0x6   : > { %242 = sbr.rel (%p239_p2) target bundleno = 1044 (0x414), region = 48  ;;  %p271_p3 = scmp.lt.s32.totalorder (!%p239_p2), %s2103_s30, 31 }
   0xb   : > { %v2141_v0 = vld [vmem:[%s3931_s1 + $0x40] sm:$0xf]  ;;  %v2270_v1 = vld [vmem:[%s3931_s1 + $0x44] sm:$0x10]  ;;  %vm396_vm0 = vcmask 1044480   ;;  %s3947_s30 = smov (!%p271_p3, %s2103_s30), 31 }
   0xc   : > { %v2142_v2 = vor.u32 %v2270_v1, %v2141_v0  ;;  %v2133_v3 = vld [vmem:[%s3931_s1 + $0x30] sm:$0xf]  ;;  %v2268_v4 = vld [vmem:[%s3931_s1 + $0x34] sm:$0xf0]  ;;  %v2125_v7 = vld [vmem:[%s3931_s1 + $0x20] sm:$0xf] }
   0xd   : > { %v2134_v6 = vor.u32 %v2268_v4, %v2133_v3  ;;  %v2266_v8 = vld [vmem:[%s3931_s1 + $0x24] sm:$0xf0]  ;;  %v2117_v10 = vld [vmem:[%s3931_s1 + $0x10] sm:$0xf]  ;;  %v2264_v11 = vld [vmem:[%s3931_s1 + $0x14] sm:$0xf0] }
   0xe   : > { %v398_v5 = vsel %vm396_vm0, %v2142_v2, 0  ;;  %v2126_v9 = vor.u32 %v2266_v8, %v2125_v7  ;;  %s2104_s20 = sshll.u32 %s3947_s30, 3  ;;  %v2269_v12 = vld [vmem:[%s3931_s1 + $0x44] sm:$0xf]  ;;  %v2143_v13 = vld [vmem:[%s3931_s1 + $0x48] sm:$0x10]  ;;  %v2118_v14 = vor.u32 %v2264_v11, %v2117_v10 }
   0xf   : > { %406 = vmatpush.bf16.msra.mxu0 %v398_v5  ;;  %2295 = vmatpush.bf16.msra.mxu1 %v398_v5  ;;  %s2479_s28 = scalar_lea.vmem %s3930_s0, %s2104_s20  ;;  %v2109_v15 = vld [vmem:[%s3931_s1] sm:$0xf]  ;;  %v2262_v16 = vld [vmem:[%s3931_s1 + $0x4] sm:$0xf0]  ;;  %v2146_v17 = vor.u32 %v2269_v12, %v2143_v13  ;;  %v2267_v24 = vld [vmem:[%s3931_s1 + $0x34] sm:$0xf]  ;;  %s3617_s26 = scalar_lea.vmem %s3937_s7, %s2104_s20 }
  0x10   : > { %2296 = vmatpush.bf16.msra.mxu2 %v398_v5  ;;  %2297 = vmatpush.bf16.msra.mxu3 %v398_v5  ;;  %v283_v18 = vld [vmem:[%s2479_s28] sm:$0xff]  ;;  %v2110_v19 = vor.u32 %v2262_v16, %v2109_v15  ;;  %v284_v20 = vld [vmem:[%s2479_s28 + $0x8] sm:$0xff]  ;;  %v2135_v25 = vld [vmem:[%s3931_s1 + $0x38] sm:$0xf0]  ;;  %vm371_vm1 = vcmask 605184   ;;  %vm941_vm9 = vcmask 523264  }
  0x11   : > { %v287_v21 = vld [vmem:[%s2479_s28 + $0x20] sm:$0xff]  ;;  %v288_v22 = vld [vmem:[%s2479_s28 + $0x28] sm:$0xff]  ;;  %v401_v23 = vsel %vm396_vm0, %v2146_v17, 0  ;;  %v299_v26 = vpack.c.bf16 %v284_v20, %v283_v18  ;;  %v2138_v28 = vor.u32 %v2267_v24, %v2135_v25  ;;  %v2263_v32 = vld [vmem:[%s3931_s1 + $0x14] sm:$0xf] }
  0x12   : > { %v301_v27 = vpack.c.bf16 %v288_v22, %v287_v21  ;;  %v2265_v29 = vld [vmem:[%s3931_s1 + $0x24] sm:$0xf]  ;;  %v2127_v30 = vld [vmem:[%s3931_s1 + $0x28] sm:$0xf0]  ;;  %v2119_v33 = vld [vmem:[%s3931_s1 + $0x18] sm:$0xf0] }
  0x13   : > { %407 = vmatpush.bf16.msra.mxu0 %v2134_v6  ;;  %2298 = vmatpush.bf16.msra.mxu1 %v2134_v6  ;;  %v2130_v31 = vor.u32 %v2265_v29, %v2127_v30  ;;  %v2122_v34 = vor.u32 %v2263_v32, %v2119_v33  ;;  %v2261_v35 = vld [vmem:[%s3931_s1 + $0x4] sm:$0xf]  ;;  %v2111_v36 = vld [vmem:[%s3931_s1 + $0x8] sm:$0xf0]  ;;  %v285_v37 = vld [vmem:[%s2479_s28 + $0x10] sm:$0xff] }
  0x14   : > { %2299 = vmatpush.bf16.msra.mxu2 %v2134_v6  ;;  %2300 = vmatpush.bf16.msra.mxu3 %v2134_v6  ;;  %v286_v38 = vld [vmem:[%s2479_s28 + $0x18] sm:$0xff]  ;;  %v289_v39 = vld [vmem:[%s2479_s28 + $0x30] sm:$0xff]  ;;  %v2114_v41 = vor.u32 %v2261_v35, %v2111_v36  ;;  %v291_v44 = vld [vmem:[%s2479_s28 + $0x40] sm:$0xff] }
  0x15   : > { %v290_v40 = vld [vmem:[%s2479_s28 + $0x38] sm:$0xff]  ;;  %v300_v42 = vpack.c.bf16 %v286_v38, %v285_v37  ;;  %v292_v45 = vld [vmem:[%s2479_s28 + $0x48] sm:$0xff]  ;;  %v293_v47 = vld [vmem:[%s2479_s28 + $0x50] sm:$0xff] }
  0x16   : > { %v302_v43 = vpack.c.bf16 %v290_v40, %v289_v39  ;;  %v303_v46 = vpack.c.bf16 %v292_v45, %v291_v44  ;;  %v294_v48 = vld [vmem:[%s2479_s28 + $0x58] sm:$0xff]  ;;  %v2277_v51 = vld [vmem:[%s3933_s3 + $0x30] sm:$0xff]  ;;  %v295_v52 = vld [vmem:[%s2479_s28 + $0x60] sm:$0xff] }
  0x17   : > { %408 = vmatpush.bf16.msra.mxu0 %v2126_v9  ;;  %2301 = vmatpush.bf16.msra.mxu1 %v2126_v9  ;;  %v2278_v49 = vld [vmem:[%s3933_s3 + $0x38] sm:$0xff]  ;;  %v304_v50 = vpack.c.bf16 %v294_v48, %v293_v47  ;;  %v296_v53 = vld [vmem:[%s2479_s28 + $0x68] sm:$0xff]  ;;  %v2275_v56 = vld [vmem:[%s3933_s3 + $0x20] sm:$0xff] }
  0x18   : > { %2302 = vmatpush.bf16.msra.mxu2 %v2126_v9  ;;  %2303 = vmatpush.bf16.msra.mxu3 %v2126_v9  ;;  %v2276_v54 = vld [vmem:[%s3933_s3 + $0x28] sm:$0xff]  ;;  %v305_v55 = vpack.c.bf16 %v296_v53, %v295_v52  ;;  %v2274_v57 = vld [vmem:[%s3933_s3 + $0x18] sm:$0xff]  ;;  %v2273_v58 = vld [vmem:[%s3933_s3 + $0x10] sm:$0xff] }
  0x19   : > { %v2272_v59 = vld [vmem:[%s3933_s3 + $0x8] sm:$0xff]  ;;  %v297_v60 = vld [vmem:[%s2479_s28 + $0x70] sm:$0xff]  ;;  %v298_v61 = vld [vmem:[%s2479_s28 + $0x78] sm:$0xff] }
  0x1a   : > { %v306_v62 = vpack.c.bf16 %v298_v61, %v297_v60  ;;  %v2271_v63 = vld [vmem:[%s3933_s3] sm:$0xff]  ;;  %v2286_v0 = vld [vmem:[%s3933_s3 + $0x78] sm:$0xff]  ;;  %v2285_v1 = vld [vmem:[%s3933_s3 + $0x70] sm:$0xff] }
  0x1b   : > { %409 = vmatpush.bf16.msra.mxu0 %v2118_v14  ;;  %2304 = vmatpush.bf16.msra.mxu1 %v2118_v14  ;;  %v2284_v2 = vld [vmem:[%s3933_s3 + $0x68] sm:$0xff]  ;;  %v2283_v3 = vld [vmem:[%s3933_s3 + $0x60] sm:$0xff]  ;;  %v2282_v4 = vld [vmem:[%s3933_s3 + $0x58] sm:$0xff] }
  0x1c   : > { %2305 = vmatpush.bf16.msra.mxu2 %v2118_v14  ;;  %2306 = vmatpush.bf16.msra.mxu3 %v2118_v14  ;;  %v317_v5 = vld [vmem:[%s3932_s2] sm:$0x3]  ;;  %v2281_v8 = vld [vmem:[%s3933_s3 + $0x50] sm:$0xff]  ;;  %v2280_v11 = vld [vmem:[%s3933_s3 + $0x48] sm:$0xff] }
  0x1d   : > { %v2587_v9 = vperm.slane %v317_v5, 0  ;;  %v2279_v16 = vld [vmem:[%s3933_s3 + $0x40] sm:$0xff]  ;;  %v2601_v29 = vperm.slane %v317_v5, 1 }
  0x1f   : > { %410 = vmatpush.bf16.msra.mxu0 %v2110_v19  ;;  %2307 = vmatpush.bf16.msra.mxu1 %v2110_v19 }
  0x20   : > { %2308 = vmatpush.bf16.msra.mxu2 %v2110_v19  ;;  %2309 = vmatpush.bf16.msra.mxu3 %v2110_v19 }
  0x22   : > { %2147 = vmatmul.msk.bf16.vlgmr.msra.gmra.mxu0 %vm371_vm1, %v299_v26  ;;  %2149 = vmatmul.msk.bf16.vlgmr.msra.gmra.mxu1 %vm371_vm1, %v301_v27 }
  0x23   : > { %455 = vmatpush.bf16.msrb.mxu1 %v401_v23  ;;  %2151 = vmatmul.msk.bf16.vlgmr.msra.gmra.mxu2 %vm371_vm1, %v303_v46 }
  0x24   : > { %681 = vmatpush.bf16.msrb.mxu2 %v2278_v49  ;;  %2154 = vmatmul.msk.bf16.vlgmr.msra.gmra.mxu3 %vm371_vm1, %v306_v62 }
  0x25   : > { %730 = vmatpush.bf16.msrb.mxu3 %v2286_v0 }
  0x27   : > { %456 = vmatpush.bf16.msrb.mxu1 %v2138_v28 }
  0x28   : > { %682 = vmatpush.bf16.msrb.mxu2 %v2277_v51 }
  0x29   : > { %731 = vmatpush.bf16.msrb.mxu3 %v2285_v1 }
  0x2b   : > { %457 = vmatpush.bf16.msrb.mxu1 %v2130_v31 }
  0x2c   : > { %683 = vmatpush.bf16.msrb.mxu2 %v2276_v54 }
  0x2d   : > { %732 = vmatpush.bf16.msrb.mxu3 %v2284_v2 }
  0x2f   : > { %458 = vmatpush.bf16.msrb.mxu1 %v2122_v34 }
  0x30   : > { %684 = vmatpush.bf16.msrb.mxu2 %v2275_v56 }
  0x31   : > { %733 = vmatpush.bf16.msrb.mxu3 %v2283_v3 }
  0x32   : > { %2148 = vmatmul.msk.bf16.gmra.mxu0 %vm371_vm1, %v300_v42  ;;  %2150 = vmatmul.msk.bf16.gmra.mxu1 %vm371_vm1, %v302_v43 }
  0x33   : > { %459 = vmatpush.bf16.msrb.mxu1 %v2114_v41  ;;  %2152 = vmatmul.msk.bf16.gmra.mxu2 %vm371_vm1, %v304_v50 }
  0x34   : > { %685 = vmatpush.bf16.msrb.mxu2 %v2274_v57 }
  0x35   : > { %734 = vmatpush.bf16.msrb.mxu3 %v2282_v4 }
  0x38   : > { %686 = vmatpush.bf16.msrb.mxu2 %v2273_v58 }
  0x39   : > { %735 = vmatpush.bf16.msrb.mxu3 %v2281_v8 }
  0x3c   : > { %687 = vmatpush.bf16.msrb.mxu2 %v2272_v59 }
  0x3d   : > { %736 = vmatpush.bf16.msrb.mxu3 %v2280_v11 }
  0x40   : > { %688 = vmatpush.bf16.msrb.mxu2 %v2271_v63 }
  0x41   : > { %737 = vmatpush.bf16.msrb.mxu3 %v2279_v16 }
  0x42   : > { %2155 = vmatmul.msk.bf16.vlgmr.msrb.gmra.mxu1 %vm371_vm1, %v299_v26 }
  0x43   : > { %2153 = vmatmul.msk.bf16.gmra.mxu2 %vm371_vm1, %v305_v55 }
  0x52   : > { %2156 = vmatmul.msk.bf16.gmra.mxu1 %vm371_vm1, %v300_v42 }
  0x62   : > { %2157 = vmatmul.msk.bf16.gmra.mxu1 %vm371_vm1, %v301_v27 }
  0x72   : > { %2158 = vmatmul.msk.bf16.gmra.mxu1 %vm371_vm1, %v302_v43 }
  0x82   : > { %2159 = vmatmul.msk.bf16.gmra.mxu1 %vm371_vm1, %v303_v46 }
  0x92   : > { %2160 = vmatmul.msk.bf16.gmra.mxu1 %vm371_vm1, %v304_v50 }
  0x9f   : > { %v412_v6 = vpop.f32.mrf.mxu0  ;;  %v422_v7 = vpop.f32.mrf.mxu1 }
  0xa0   : > { %v413_v10 = vadd.f32 %v412_v6, %v2587_v9  ;;  %v423_v31 = vadd.f32 %v422_v7, %v2587_v9 }
  0xa2   : > { %2161 = vmatmul.msk.bf16.gmra.mxu1 %vm371_vm1, %v305_v55  ;;  %v501_v14 = vmax.f32 %v413_v10, 0.0  ;;  %v509_v36 = vmax.f32 %v423_v31, 0.0 }
  0xa6   : > { %v432_v51 = vpop.f32.mrf.mxu2 }
  0xa7   : > { %v414_v12 = vpop.f32.mrf.mxu0  ;;  %v424_v13 = vpop.f32.mrf.mxu1  ;;  %v433_v55 = vadd.f32 %v432_v51, %v2587_v9 }
  0xa8   : > { %v415_v15 = vadd.f32 %v414_v12, %v2587_v9  ;;  %v425_v30 = vadd.f32 %v424_v13, %v2587_v9 }
  0xa9   : > { %v517_v59 = vmax.f32 %v433_v55, 0.0  ;;  %v2291_v55 = vld [vmem:[%s3935_s5 + $0x20] sm:$0xff] }
  0xaa   : > { %v503_v17 = vmax.f32 %v415_v15, 0.0  ;;  %v511_v34 = vmax.f32 %v425_v30, 0.0 }
  0xac   : > { %v533_v18 = vpack.c.bf16 %v503_v17, %v501_v14  ;;  %v537_v40 = vpack.c.bf16 %v511_v34, %v509_v36 }
  0xae   : > { %689 = vmatmul.bf16.vlgmr.msrb.gmra.mxu2 %v533_v18  ;;  %v434_v56 = vpop.f32.mrf.mxu2 }
  0xaf   : > { %v417_v19 = vpop.f32.mrf.mxu0  ;;  %v427_v20 = vpop.f32.mrf.mxu1  ;;  %v435_v57 = vadd.f32 %v434_v56, %v2587_v9 }
  0xb0   : > { %v418_v21 = vadd.f32 %v417_v19, %v2587_v9  ;;  %v428_v44 = vadd.f32 %v427_v20, %v2587_v9 }
  0xb1   : > { %v519_v60 = vmax.f32 %v435_v57, 0.0  ;;  %v2290_v57 = vld [vmem:[%s3935_s5 + $0x18] sm:$0xff] }
  0xb2   : > { %2162 = vmatmul.msk.bf16.gmra.mxu1 %vm371_vm1, %v306_v62  ;;  %v505_v24 = vmax.f32 %v418_v21, 0.0  ;;  %v513_v49 = vmax.f32 %v428_v44, 0.0 }
  0xb3   : > { %v541_v1 = vpack.c.bf16 %v519_v60, %v517_v59  ;;  %v2289_v60 = vld [vmem:[%s3935_s5 + $0x10] sm:$0xff] }
  0xb6   : > { %v437_v2 = vpop.f32.mrf.mxu2 }
  0xb7   : > { %v419_v22 = vpop.f32.mrf.mxu0  ;;  %v429_v23 = vpop.f32.mrf.mxu1  ;;  %v438_v5 = vadd.f32 %v437_v2, %v2587_v9 }
  0xb8   : > { %v420_v25 = vadd.f32 %v419_v22, %v2587_v9  ;;  %v430_v42 = vadd.f32 %v429_v23, %v2587_v9 }
  0xb9   : > { %v521_v10 = vmax.f32 %v438_v5, 0.0 }
  0xba   : > { %v507_v26 = vmax.f32 %v420_v25, 0.0  ;;  %v515_v46 = vmax.f32 %v430_v42, 0.0 }
  0xbc   : > { %v535_v27 = vpack.c.bf16 %v507_v26, %v505_v24  ;;  %v539_v52 = vpack.c.bf16 %v515_v46, %v513_v49 }
  0xbe   : > { %694 = vmatmul.bf16.gmra.mxu2 %v535_v27  ;;  %v439_v6 = vpop.f32.mrf.mxu2 }
  0xbf   : > { %v461_v28 = vpop.f32.mrf.mxu1  ;;  %v440_v7 = vadd.f32 %v439_v6, %v2587_v9 }
  0xc0   : > { %v462_v32 = vadd.f32 %v461_v28, %v2601_v29 }
  0xc1   : > { %v523_v11 = vmax.f32 %v440_v7, 0.0 }
  0xc2   : > { %v502_v37 = vmax.f32 %v462_v32, 0.0 }
  0xc3   : > { %v543_v16 = vpack.c.bf16 %v523_v11, %v521_v10  ;;  %v2658_v10 = vld [vmem:[%s3934_s4] ss:$0 sm:$0xff] }
  0xc6   : > { %v442_v17 = vpop.f32.mrf.mxu2 }
  0xc7   : > { %v463_v33 = vpop.f32.mrf.mxu1  ;;  %v443_v20 = vadd.f32 %v442_v17, %v2587_v9 }
  0xc8   : > { %v464_v35 = vadd.f32 %v463_v33, %v2601_v29  ;;  %v447_v33 = vpop.f32.mrf.mxu3 }
  0xc9   : > { %v525_v24 = vmax.f32 %v443_v20, 0.0 }
  0xca   : > { %v504_v38 = vmax.f32 %v464_v35, 0.0  ;;  %v448_v35 = vadd.f32 %v447_v33, %v2587_v9 }
  0xcc   : > { %v534_v39 = vpack.c.bf16 %v504_v38, %v502_v37  ;;  %v529_v38 = vmax.f32 %v448_v35, 0.0 }
  0xce   : > { %699 = vmatmul.bf16.gmra.mxu2 %v537_v40  ;;  %738 = vmatmul.bf16.vlgmr.msrb.gmra.mxu3 %v534_v39  ;;  %v444_v21 = vpop.f32.mrf.mxu2 }
  0xcf   : > { %v466_v41 = vpop.f32.mrf.mxu1  ;;  %v445_v22 = vadd.f32 %v444_v21, %v2587_v9 }
  0xd0   : > { %v467_v43 = vadd.f32 %v466_v41, %v2601_v29  ;;  %v449_v37 = vpop.f32.mrf.mxu3 }
  0xd1   : > { %v527_v25 = vmax.f32 %v445_v22, 0.0  ;;  %v450_v39 = vadd.f32 %v449_v37, %v2587_v9  ;;  %v2293_v9 = vld [vmem:[%s3935_s5 + $0x30] sm:$0xff] }
  0xd2   : > { %v506_v47 = vmax.f32 %v467_v43, 0.0 }
  0xd3   : > { %v545_v31 = vpack.c.bf16 %v527_v25, %v525_v24  ;;  %v531_v43 = vmax.f32 %v450_v39, 0.0 }
  0xd7   : > { %v468_v45 = vpop.f32.mrf.mxu1 }
  0xd8   : > { %v469_v48 = vadd.f32 %v468_v45, %v2601_v29  ;;  %v547_v45 = vpack.c.bf16 %v531_v43, %v529_v38 }
  0xda   : > { %v508_v50 = vmax.f32 %v469_v48, 0.0 }
  0xdc   : > { %v536_v53 = vpack.c.bf16 %v508_v50, %v506_v47  ;;  %v2294_v47 = vld [vmem:[%s3935_s5 + $0x38] sm:$0xff]  ;;  %v2292_v50 = vld [vmem:[%s3935_s5 + $0x28] sm:$0xff] }
  0xdd   : > { %871 = vmatpush.bf16.msrb.mxu0 %v2294_v47 }
  0xde   : > { %704 = vmatmul.bf16.gmra.mxu2 %v539_v52  ;;  %743 = vmatmul.bf16.gmra.mxu3 %v536_v53 }
  0xdf   : > { %v471_v54 = vpop.f32.mrf.mxu1 }
  0xe0   : > { %v472_v58 = vadd.f32 %v471_v54, %v2601_v29 }
  0xe1   : > { %872 = vmatpush.bf16.msrb.mxu0 %v2293_v9 }
  0xe2   : > { %v510_v62 = vmax.f32 %v472_v58, 0.0 }
  0xe5   : > { %873 = vmatpush.bf16.msrb.mxu0 %v2292_v50 }
  0xe7   : > { %v473_v61 = vpop.f32.mrf.mxu1 }
  0xe8   : > { %v474_v63 = vadd.f32 %v473_v61, %v2601_v29 }
  0xe9   : > { %874 = vmatpush.bf16.msrb.mxu0 %v2291_v55 }
  0xea   : > { %v512_v0 = vmax.f32 %v474_v63, 0.0 }
  0xec   : > { %v538_v3 = vpack.c.bf16 %v512_v0, %v510_v62  ;;  %v2288_v62 = vld [vmem:[%s3935_s5 + $0x8] sm:$0xff] }
  0xed   : > { %875 = vmatpush.bf16.msrb.mxu0 %v2290_v57 }
  0xee   : > { %748 = vmatmul.bf16.gmra.mxu3 %v538_v3  ;;  %709 = vmatmul.bf16.gmra.mxu2 %v541_v1 }
  0xef   : > { %v476_v4 = vpop.f32.mrf.mxu1 }
  0xf0   : > { %v477_v8 = vadd.f32 %v476_v4, %v2601_v29  ;;  %v2287_v4 = vld [vmem:[%s3935_s5] sm:$0xff] }
  0xf1   : > { %876 = vmatpush.bf16.msrb.mxu0 %v2289_v60 }
  0xf2   : > { %v514_v13 = vmax.f32 %v477_v8, 0.0 }
  0xf5   : > { %877 = vmatpush.bf16.msrb.mxu0 %v2288_v62 }
  0xf7   : > { %v478_v12 = vpop.f32.mrf.mxu1 }
  0xf8   : > { %v479_v14 = vadd.f32 %v478_v12, %v2601_v29 }
  0xf9   : > { %878 = vmatpush.bf16.msrb.mxu0 %v2287_v4 }
  0xfa   : > { %v516_v15 = vmax.f32 %v479_v14, 0.0 }
  0xfc   : > { %v540_v18 = vpack.c.bf16 %v516_v15, %v514_v13 }
  0xfe   : > { %753 = vmatmul.bf16.gmra.mxu3 %v540_v18  ;;  %714 = vmatmul.bf16.gmra.mxu2 %v543_v16 }
  0xff   : > { %v481_v19 = vpop.f32.mrf.mxu1 }
 0x100   : > { %v482_v23 = vadd.f32 %v481_v19, %v2601_v29 }
 0x102   : > { %v518_v27 = vmax.f32 %v482_v23, 0.0 }
 0x107   : > { %v483_v26 = vpop.f32.mrf.mxu1 }
 0x108   : > { %v484_v28 = vadd.f32 %v483_v26, %v2601_v29 }
 0x10a   : > { %v520_v30 = vmax.f32 %v484_v28, 0.0 }
 0x10c   : > { %v542_v32 = vpack.c.bf16 %v520_v30, %v518_v27 }
 0x10e   : > { %758 = vmatmul.bf16.gmra.mxu3 %v542_v32  ;;  %719 = vmatmul.bf16.gmra.mxu2 %v545_v31 }
 0x10f   : > { %v486_v34 = vpop.f32.mrf.mxu1 }
 0x110   : > { %v487_v36 = vadd.f32 %v486_v34, %v2601_v29 }
 0x112   : > { %v522_v41 = vmax.f32 %v487_v36, 0.0 }
 0x117   : > { %v488_v40 = vpop.f32.mrf.mxu1 }
 0x118   : > { %v489_v42 = vadd.f32 %v488_v40, %v2601_v29 }
 0x11a   : > { %v524_v44 = vmax.f32 %v489_v42, 0.0 }
 0x11c   : > { %v544_v46 = vpack.c.bf16 %v524_v44, %v522_v41 }
 0x11e   : > { %763 = vmatmul.bf16.gmra.mxu3 %v544_v46  ;;  %724 = vmatmul.bf16.gmra.mxu2 %v547_v45 }
 0x11f   : > { %v491_v48 = vpop.f32.mrf.mxu1 }
 0x120   : > { %v492_v49 = vadd.f32 %v491_v48, %v2601_v29 }
 0x122   : > { %v526_v52 = vmax.f32 %v492_v49, 0.0 }
 0x127   : > { %v493_v51 = vpop.f32.mrf.mxu1 }
 0x128   : > { %v494_v53 = vadd.f32 %v493_v51, %v2601_v29 }
 0x12a   : > { %v528_v54 = vmax.f32 %v494_v53, 0.0 }
 0x12c   : > { %v546_v56 = vpack.c.bf16 %v528_v54, %v526_v52 }
 0x12e   : > { %768 = vmatmul.bf16.gmra.mxu3 %v546_v56 }
 0x12f   : > { %v496_v58 = vpop.f32.mrf.mxu1 }
 0x130   : > { %v497_v61 = vadd.f32 %v496_v58, %v2601_v29 }
 0x131   : > { %v690_v59 = vpop.f32.mrf.mxu2 }
 0x132   : > { %v530_v0 = vmax.f32 %v497_v61, 0.0 }
 0x137   : > { %v498_v63 = vpop.f32.mrf.mxu1 }
 0x138   : > { %v499_v1 = vadd.f32 %v498_v63, %v2601_v29  ;;  %v691_v29 = vadd.f32 %v2658_v10, %v690_v59 }
 0x139   : > { %v692_v2 = vpop.f32.mrf.mxu2 }
 0x13a   : > { %v532_v3 = vmax.f32 %v499_v1, 0.0  ;;  %v693_v12 = vadd.f32 %v2658_v10, %v692_v2 }
 0x13c   : > { %v548_v5 = vpack.c.bf16 %v532_v3, %v530_v0 }
 0x13e   : > { %773 = vmatmul.bf16.gmra.mxu3 %v548_v5 }
 0x141   : > { %v695_v6 = vpop.f32.mrf.mxu2 }
 0x142   : > { %v696_v21 = vadd.f32 %v2658_v10, %v695_v6 }
 0x149   : > { %v697_v7 = vpop.f32.mrf.mxu2 }
 0x14a   : > { %v698_v22 = vadd.f32 %v2658_v10, %v697_v7 }
 0x151   : > { %v739_v8 = vpop.f32.mrf.mxu3  ;;  %v700_v11 = vpop.f32.mrf.mxu2 }
 0x152   : > { %v740_v13 = vadd.f32 %v739_v8, %v691_v29  ;;  %v701_v33 = vadd.f32 %v2658_v10, %v700_v11 }
 0x154   : > { %v779_v16 = vmax.f32 %v740_v13, 0.0 }
 0x159   : > { %v741_v14 = vpop.f32.mrf.mxu3  ;;  %v702_v19 = vpop.f32.mrf.mxu2 }
 0x15a   : > { %v742_v15 = vadd.f32 %v741_v14, %v693_v12  ;;  %v703_v34 = vadd.f32 %v2658_v10, %v702_v19 }
 0x15c   : > { %v780_v17 = vmax.f32 %v742_v15, 0.0 }
 0x15e   : > { %v795_v18 = vpack.c.bf16 %v780_v17, %v779_v16 }
 0x160   : > { %879 = vmatmul.bf16.vlgmr.msrb.gmra.mxu0 %v795_v18 }
 0x161   : > { %v744_v20 = vpop.f32.mrf.mxu3  ;;  %v705_v27 = vpop.f32.mrf.mxu2 }
 0x162   : > { %v745_v23 = vadd.f32 %v744_v20, %v696_v21  ;;  %v706_v43 = vadd.f32 %v2658_v10, %v705_v27 }
 0x164   : > { %v781_v25 = vmax.f32 %v745_v23, 0.0 }
 0x169   : > { %v746_v24 = vpop.f32.mrf.mxu3  ;;  %v707_v32 = vpop.f32.mrf.mxu2 }
 0x16a   : > { %v747_v26 = vadd.f32 %v746_v24, %v698_v22  ;;  %v708_v45 = vadd.f32 %v2658_v10, %v707_v32 }
 0x16c   : > { %v782_v28 = vmax.f32 %v747_v26, 0.0 }
 0x16e   : > { %v796_v30 = vpack.c.bf16 %v782_v28, %v781_v25 }
 0x170   : > { %884 = vmatmul.bf16.gmra.mxu0 %v796_v30 }
 0x171   : > { %v749_v31 = vpop.f32.mrf.mxu3  ;;  %v710_v40 = vpop.f32.mrf.mxu2 }
 0x172   : > { %v750_v35 = vadd.f32 %v749_v31, %v701_v33  ;;  %v711_v53 = vadd.f32 %v2658_v10, %v710_v40  ;;  %v920_v31 = vlaneseq  ;;  %v2683_v33 = vld [vmem:[%s3936_s6] ss:$0 sm:$0xff] }
 0x174   : > { %v783_v38 = vmax.f32 %v750_v35, 0.0  ;;  %v2676_v32 = vand.u32 127, %v920_v31 }
 0x176   : > { %vm1089_vm2 = vcmp.ge.s32.totalorder %v2676_v32, 30  ;;  %vm1090_vm3 = vcmp.lt.s32.totalorder %v2676_v32, 34  ;;  %vm1006_vm4 = vcmp.ge.s32.totalorder %v2676_v32, 15  ;;  %vm1007_vm5 = vcmp.lt.s32.totalorder %v2676_v32, 30 }
 0x177   : > { %vm2687_vm6 = vmand %vm1089_vm2, %vm1090_vm3  ;;  %vm923_vm8 = vcmp.lt.s32.totalorder %v2676_v32, 15  ;;  %vm1255_vm10 = vcmp.ge.s32.totalorder %v2676_v32, 49  ;;  %vm1256_vm11 = vcmp.lt.s32.totalorder %v2676_v32, 64  ;;  %vm1172_vm12 = vcmp.ge.s32.totalorder %v2676_v32, 34 }
 0x178   : > { %vm2691_vm7 = vmand %vm1006_vm4, %vm1007_vm5  ;;  %vm1173_vm13 = vcmp.lt.s32.totalorder %v2676_v32, 49 }
 0x179   : > { %v751_v36 = vpop.f32.mrf.mxu3  ;;  %v712_v44 = vpop.f32.mrf.mxu2  ;;  %vm2715_vm14 = vmand %vm1255_vm10, %vm1256_vm11 }
 0x17a   : > { %v752_v37 = vadd.f32 %v751_v36, %v703_v34  ;;  %v713_v55 = vadd.f32 %v2658_v10, %v712_v44  ;;  %vm2719_vm15 = vmand %vm1172_vm12, %vm1173_vm13 }
 0x17c   : > { %v784_v39 = vmax.f32 %v752_v37, 0.0 }
 0x17e   : > { %v797_v41 = vpack.c.bf16 %v784_v39, %v783_v38 }
 0x180   : > { %889 = vmatmul.bf16.gmra.mxu0 %v797_v41 }
 0x181   : > { %v754_v42 = vpop.f32.mrf.mxu3  ;;  %v715_v52 = vpop.f32.mrf.mxu2 }
 0x182   : > { %v755_v46 = vadd.f32 %v754_v42, %v706_v43  ;;  %v716_v63 = vadd.f32 %v2658_v10, %v715_v52 }
 0x184   : > { %v785_v9 = vmax.f32 %v755_v46, 0.0 }
 0x189   : > { %v756_v47 = vpop.f32.mrf.mxu3  ;;  %v717_v59 = vpop.f32.mrf.mxu2 }
 0x18a   : > { %v757_v48 = vadd.f32 %v756_v47, %v708_v45  ;;  %v718_v2 = vadd.f32 %v2658_v10, %v717_v59 }
 0x18c   : > { %v786_v49 = vmax.f32 %v757_v48, 0.0 }
 0x18e   : > { %v798_v50 = vpack.c.bf16 %v786_v49, %v785_v9 }
 0x190   : > { %894 = vmatmul.bf16.gmra.mxu0 %v798_v50 }
 0x191   : > { %v759_v51 = vpop.f32.mrf.mxu3  ;;  %v720_v0 = vpop.f32.mrf.mxu2 }
 0x192   : > { %v760_v54 = vadd.f32 %v759_v51, %v711_v53  ;;  %v721_v11 = vadd.f32 %v2658_v10, %v720_v0 }
 0x194   : > { %v787_v57 = vmax.f32 %v760_v54, 0.0 }
 0x199   : > { %v761_v56 = vpop.f32.mrf.mxu3  ;;  %v722_v8 = vpop.f32.mrf.mxu2 }
 0x19a   : > { %v762_v58 = vadd.f32 %v761_v56, %v713_v55  ;;  %v723_v13 = vadd.f32 %v2658_v10, %v722_v8 }
 0x19c   : > { %v788_v60 = vmax.f32 %v762_v58, 0.0 }
 0x19e   : > { %v799_v61 = vpack.c.bf16 %v788_v60, %v787_v57 }
 0x1a0   : > { %899 = vmatmul.bf16.gmra.mxu0 %v799_v61 }
 0x1a1   : > { %v764_v62 = vpop.f32.mrf.mxu3  ;;  %v725_v15 = vpop.f32.mrf.mxu2 }
 0x1a2   : > { %v765_v1 = vadd.f32 %v764_v62, %v716_v63  ;;  %v726_v21 = vadd.f32 %v2658_v10, %v725_v15 }
 0x1a4   : > { %v789_v4 = vmax.f32 %v765_v1, 0.0 }
 0x1a9   : > { %v766_v3 = vpop.f32.mrf.mxu3  ;;  %v727_v22 = vpop.f32.mrf.mxu2 }
 0x1aa   : > { %v767_v5 = vadd.f32 %v766_v3, %v718_v2  ;;  %v728_v24 = vadd.f32 %v2658_v10, %v727_v22 }
 0x1ac   : > { %v790_v6 = vmax.f32 %v767_v5, 0.0 }
 0x1ae   : > { %v800_v7 = vpack.c.bf16 %v790_v6, %v789_v4 }
 0x1b0   : > { %904 = vmatmul.bf16.gmra.mxu0 %v800_v7 }
 0x1b1   : > { %v769_v29 = vpop.f32.mrf.mxu3 }
 0x1b2   : > { %v770_v12 = vadd.f32 %v769_v29, %v721_v11 }
 0x1b4   : > { %v791_v16 = vmax.f32 %v770_v12, 0.0 }
 0x1b9   : > { %v771_v14 = vpop.f32.mrf.mxu3 }
 0x1ba   : > { %v772_v17 = vadd.f32 %v771_v14, %v723_v13 }
 0x1bc   : > { %v792_v18 = vmax.f32 %v772_v17, 0.0 }
 0x1be   : > { %v801_v19 = vpack.c.bf16 %v792_v18, %v791_v16 }
 0x1c0   : > { %909 = vmatmul.bf16.gmra.mxu0 %v801_v19 }
 0x1c1   : > { %v774_v20 = vpop.f32.mrf.mxu3 }
 0x1c2   : > { %v775_v23 = vadd.f32 %v774_v20, %v726_v21 }
 0x1c4   : > { %v793_v26 = vmax.f32 %v775_v23, 0.0 }
 0x1c9   : > { %v776_v25 = vpop.f32.mrf.mxu3 }
 0x1ca   : > { %v777_v27 = vadd.f32 %v776_v25, %v728_v24 }
 0x1cc   : > { %v794_v28 = vmax.f32 %v777_v27, 0.0 }
 0x1ce   : > { %v802_v30 = vpack.c.bf16 %v794_v28, %v793_v26 }
 0x1d0   : > { %914 = vmatmul.bf16.gmra.mxu0 %v802_v30 }
 0x1dd   : > { %v880_v34 = vpop.f32.mrf.mxu0 }
 0x1de   : > { %v2697_v36 = vadd.f32 %v2683_v33, %v880_v34 }
 0x1e0   : > { %v1092_v37 = vsel %vm2687_vm6, %v2697_v36, -inf  ;;  %v1009_v38 = vsel %vm2691_vm7, %v2697_v36, -inf  ;;  %v925_v39 = vsel %vm923_vm8, %v2697_v36, -inf  ;;  %v1258_v47 = vsel %vm2715_vm14, %v2697_v36, -inf }
 0x1e1   : > { %v1108_v40 = vsel %vm941_vm9, %v1092_v37, -inf  ;;  %v1025_v41 = vsel %vm941_vm9, %v1009_v38, -inf  ;;  %v942_v42 = vsel %vm941_vm9, %v925_v39, -inf  ;;  %v1175_v48 = vsel %vm2719_vm15, %v2697_v36, -inf }
 0x1e2   : > { %1109 = vmax.xlane.f32.xlu2 %v1108_v40  ;;  %1026 = vmax.xlane.f32.xlu1 %v1025_v41  ;;  %v1274_v50 = vsel %vm941_vm9, %v1258_v47, -inf  ;;  %v1191_v51 = vsel %vm941_vm9, %v1175_v48, -inf }
 0x1e3   : > { %943 = vmax.xlane.f32.xlu0 %v942_v42 }
 0x1e5   : > { %v882_v45 = vpop.f32.mrf.mxu0 }
 0x1e6   : > { %v2724_v46 = vadd.f32 %v2683_v33, %v882_v45 }
 0x1e8   : > { %v1010_v9 = vsel %vm2691_vm7, %v2724_v46, -inf  ;;  %v1259_v53 = vsel %vm2715_vm14, %v2724_v46, -inf  ;;  %v1176_v54 = vsel %vm2719_vm15, %v2724_v46, -inf  ;;  %v926_v55 = vsel %vm923_vm8, %v2724_v46, -inf }
 0x1e9   : > { %v1028_v49 = vsel %vm941_vm9, %v1010_v9, -inf  ;;  %v1277_v56 = vsel %vm941_vm9, %v1259_v53, -inf  ;;  %v1194_v57 = vsel %vm941_vm9, %v1176_v54, -inf  ;;  %v945_v59 = vsel %vm941_vm9, %v926_v55, -inf }
 0x1ea   : > { %1029 = vmax.xlane.f32.xlu2 %v1028_v49  ;;  %1275 = vmax.xlane.f32.xlu1 %v1274_v50  ;;  %v1093_v63 = vsel %vm2687_vm6, %v2724_v46, -inf }
 0x1eb   : > { %1192 = vmax.xlane.f32.xlu0 %v1191_v51  ;;  %v1111_v3 = vsel %vm941_vm9, %v1093_v63, -inf }
 0x1ed   : > { %v885_v52 = vpop.f32.mrf.mxu0 }
 0x1ee   : > { %v2750_v58 = vadd.f32 %v2683_v33, %v885_v52 }
 0x1f0   : > { %v1177_v61 = vsel %vm2719_vm15, %v2750_v58, -inf  ;;  %v927_v62 = vsel %vm923_vm8, %v2750_v58, -inf  ;;  %v1094_v5 = vsel %vm2687_vm6, %v2750_v58, -inf  ;;  %v1011_v7 = vsel %vm2691_vm7, %v2750_v58, -inf }
 0x1f1   : > { %v1197_v0 = vsel %vm941_vm9, %v1177_v61, -inf  ;;  %v948_v1 = vsel %vm941_vm9, %v927_v62, -inf  ;;  %v1114_v29 = vsel %vm941_vm9, %v1094_v5, -inf  ;;  %v1031_v12 = vsel %vm941_vm9, %v1011_v7, -inf }
 0x1f2   : > { %1278 = vmax.xlane.f32.xlu2 %v1277_v56  ;;  %1195 = vmax.xlane.f32.xlu1 %v1194_v57  ;;  %v1260_v15 = vsel %vm2715_vm14, %v2750_v58, -inf }
 0x1f3   : > { %946 = vmax.xlane.f32.xlu0 %v945_v59  ;;  %v1280_v18 = vsel %vm941_vm9, %v1260_v15, -inf }
 0x1f5   : > { %v887_v60 = vpop.f32.mrf.mxu0 }
 0x1f6   : > { %v2765_v2 = vadd.f32 %v2683_v33, %v887_v60 }
 0x1f8   : > { %v1095_v4 = vsel %vm2687_vm6, %v2765_v2, -inf  ;;  %v928_v14 = vsel %vm923_vm8, %v2765_v2, -inf  ;;  %v1012_v20 = vsel %vm2691_vm7, %v2765_v2, -inf  ;;  %v1178_v21 = vsel %vm2719_vm15, %v2765_v2, -inf }
 0x1f9   : > { %v1117_v8 = vsel %vm941_vm9, %v1095_v4, -inf  ;;  %v951_v17 = vsel %vm941_vm9, %v928_v14, -inf  ;;  %v1034_v23 = vsel %vm941_vm9, %v1012_v20, -inf  ;;  %v1200_v24 = vsel %vm941_vm9, %v1178_v21, -inf }
 0x1fa   : > { %1198 = vmax.xlane.f32.xlu2 %v1197_v0  ;;  %949 = vmax.xlane.f32.xlu1 %v948_v1  ;;  %v1261_v26 = vsel %vm2715_vm14, %v2765_v2, -inf }
 0x1fb   : > { %1112 = vmax.xlane.f32.xlu0 %v1111_v3  ;;  %v1283_v31 = vsel %vm941_vm9, %v1261_v26, -inf }
 0x1fd   : > { %v890_v6 = vpop.f32.mrf.mxu0 }
 0x1fe   : > { %v2780_v11 = vadd.f32 %v2683_v33, %v890_v6 }
 0x200   : > { %v929_v13 = vsel %vm923_vm8, %v2780_v11, -inf  ;;  %v1013_v19 = vsel %vm2691_vm7, %v2780_v11, -inf  ;;  %v1262_v25 = vsel %vm2715_vm14, %v2780_v11, -inf  ;;  %v1096_v28 = vsel %vm2687_vm6, %v2780_v11, -inf }
 0x201   : > { %v954_v16 = vsel %vm941_vm9, %v929_v13, -inf  ;;  %v1037_v22 = vsel %vm941_vm9, %v1013_v19, -inf  ;;  %v1286_v30 = vsel %vm941_vm9, %v1262_v25, -inf  ;;  %v1120_v37 = vsel %vm941_vm9, %v1096_v28, -inf }
 0x202   : > { %1118 = vmax.xlane.f32.xlu2 %v1117_v8  ;;  %1115 = vmax.xlane.f32.xlu1 %v1114_v29  ;;  %v1179_v39 = vsel %vm2719_vm15, %v2780_v11, -inf }
 0x203   : > { %1032 = vmax.xlane.f32.xlu0 %v1031_v12  ;;  %v1203_v42 = vsel %vm941_vm9, %v1179_v39, -inf }
 0x205   : > { %v892_v27 = vpop.f32.mrf.mxu0 }
 0x206   : > { %v2819_v34 = vadd.f32 %v2683_v33, %v892_v27 }
 0x208   : > { %v930_v38 = vsel %vm923_vm8, %v2819_v34, -inf  ;;  %v1014_v40 = vsel %vm2691_vm7, %v2819_v34, -inf  ;;  %v1180_v48 = vsel %vm2719_vm15, %v2819_v34, -inf  ;;  %v1097_v9 = vsel %vm2687_vm6, %v2819_v34, -inf }
 0x209   : > { %v957_v41 = vsel %vm941_vm9, %v930_v38, -inf  ;;  %v1040_v45 = vsel %vm941_vm9, %v1014_v40, -inf  ;;  %v1263_v49 = vsel %vm2715_vm14, %v2819_v34, -inf  ;;  %v1206_v50 = vsel %vm941_vm9, %v1180_v48, -inf }
 0x20a   : > { %955 = vmax.xlane.f32.xlu2 %v954_v16  ;;  %952 = vmax.xlane.f32.xlu1 %v951_v17  ;;  %v1123_v51 = vsel %vm941_vm9, %v1097_v9, -inf  ;;  %v1289_v53 = vsel %vm941_vm9, %v1263_v49, -inf }
 0x20b   : > { %1281 = vmax.xlane.f32.xlu0 %v1280_v18 }
 0x20d   : > { %v895_v47 = vpop.f32.mrf.mxu0 }
 0x20e   : > { %v2846_v52 = vadd.f32 %v2683_v33, %v895_v47 }
 0x210   : > { %v1098_v54 = vsel %vm2687_vm6, %v2846_v52, -inf  ;;  %v1015_v55 = vsel %vm2691_vm7, %v2846_v52, -inf  ;;  %v931_v57 = vsel %vm923_vm8, %v2846_v52, -inf  ;;  %v1264_v0 = vsel %vm2715_vm14, %v2846_v52, -inf }
 0x211   : > { %v1126_v59 = vsel %vm941_vm9, %v1098_v54, -inf  ;;  %v1043_v60 = vsel %vm941_vm9, %v1015_v55, -inf  ;;  %v960_v62 = vsel %vm941_vm9, %v931_v57, -inf  ;;  %v1181_v1 = vsel %vm2719_vm15, %v2846_v52, -inf }
 0x212   : > { %1038 = vmax.xlane.f32.xlu2 %v1037_v22  ;;  %1035 = vmax.xlane.f32.xlu1 %v1034_v23  ;;  %v1292_v4 = vsel %vm941_vm9, %v1264_v0, -inf  ;;  %v1209_v5 = vsel %vm941_vm9, %v1181_v1, -inf }
 0x213   : > { %1201 = vmax.xlane.f32.xlu0 %v1200_v24 }
 0x215   : > { %v897_v56 = vpop.f32.mrf.mxu0 }
 0x216   : > { %v2861_v61 = vadd.f32 %v2683_v33, %v897_v56 }
 0x218   : > { %v1016_v63 = vsel %vm2691_vm7, %v2861_v61, -inf  ;;  %v1265_v6 = vsel %vm2715_vm14, %v2861_v61, -inf  ;;  %v932_v7 = vsel %vm923_vm8, %v2861_v61, -inf  ;;  %v1099_v8 = vsel %vm2687_vm6, %v2861_v61, -inf }
 0x219   : > { %v1046_v3 = vsel %vm941_vm9, %v1016_v63, -inf  ;;  %v1295_v12 = vsel %vm941_vm9, %v1265_v6, -inf  ;;  %v963_v13 = vsel %vm941_vm9, %v932_v7, -inf  ;;  %v1129_v15 = vsel %vm941_vm9, %v1099_v8, -inf }
 0x21a   : > { %1287 = vmax.xlane.f32.xlu2 %v1286_v30  ;;  %1284 = vmax.xlane.f32.xlu1 %v1283_v31  ;;  %v1182_v17 = vsel %vm2719_vm15, %v2861_v61, -inf }
 0x21b   : > { %1121 = vmax.xlane.f32.xlu0 %v1120_v37  ;;  %v1212_v20 = vsel %vm941_vm9, %v1182_v17, -inf }
 0x21d   : > { %v900_v29 = vpop.f32.mrf.mxu0 }
 0x21e   : > { %v2888_v14 = vadd.f32 %v2683_v33, %v900_v29 }
 0x220   : > { %v933_v16 = vsel %vm923_vm8, %v2888_v14, -inf  ;;  %v1017_v18 = vsel %vm2691_vm7, %v2888_v14, -inf  ;;  %v1183_v22 = vsel %vm2719_vm15, %v2888_v14, -inf  ;;  %v1100_v23 = vsel %vm2687_vm6, %v2888_v14, -inf }
 0x221   : > { %v966_v19 = vsel %vm941_vm9, %v933_v16, -inf  ;;  %v1049_v21 = vsel %vm941_vm9, %v1017_v18, -inf  ;;  %v1266_v25 = vsel %vm2715_vm14, %v2888_v14, -inf  ;;  %v1215_v26 = vsel %vm941_vm9, %v1183_v22, -inf }
 0x222   : > { %958 = vmax.xlane.f32.xlu2 %v957_v41  ;;  %1204 = vmax.xlane.f32.xlu1 %v1203_v42  ;;  %v1132_v27 = vsel %vm941_vm9, %v1100_v23, -inf  ;;  %v1298_v30 = vsel %vm941_vm9, %v1266_v25, -inf }
 0x223   : > { %1041 = vmax.xlane.f32.xlu0 %v1040_v45 }
 0x225   : > { %v902_v24 = vpop.f32.mrf.mxu0 }
 0x226   : > { %v2915_v28 = vadd.f32 %v2683_v33, %v902_v24 }
 0x228   : > { %v1101_v39 = vsel %vm2687_vm6, %v2915_v28, -inf  ;;  %v1018_v40 = vsel %vm2691_vm7, %v2915_v28, -inf  ;;  %v934_v41 = vsel %vm923_vm8, %v2915_v28, -inf  ;;  %v1267_v54 = vsel %vm2715_vm14, %v2915_v28, -inf }
 0x229   : > { %v1135_v45 = vsel %vm941_vm9, %v1101_v39, -inf  ;;  %v1052_v47 = vsel %vm941_vm9, %v1018_v40, -inf  ;;  %v969_v9 = vsel %vm941_vm9, %v934_v41, -inf  ;;  %v1184_v55 = vsel %vm2719_vm15, %v2915_v28, -inf }
 0x22a   : > { %1207 = vmax.xlane.f32.xlu2 %v1206_v50  ;;  %1124 = vmax.xlane.f32.xlu1 %v1123_v51  ;;  %v1301_v57 = vsel %vm941_vm9, %v1267_v54, -inf }
 0x22b   : > { %1290 = vmax.xlane.f32.xlu0 %v1289_v53 }
 0x22d   : > { %v905_v42 = vpop.f32.mrf.mxu0 }
 0x22e   : > { %v2936_v48 = vadd.f32 %v2683_v33, %v905_v42 }
 0x230   : > { %v1019_v53 = vsel %vm2691_vm7, %v2936_v48, -inf  ;;  %v1268_v0 = vsel %vm2715_vm14, %v2936_v48, -inf  ;;  %v935_v1 = vsel %vm923_vm8, %v2936_v48, -inf  ;;  %v1185_v16 = vsel %vm2719_vm15, %v2936_v48, -inf }
 0x231   : > { %v1055_v56 = vsel %vm941_vm9, %v1019_v53, -inf  ;;  %v972_v6 = vsel %vm941_vm9, %v935_v1, -inf }
 0x232   : > { %1127 = vmax.xlane.f32.xlu2 %v1126_v59  ;;  %1044 = vmax.xlane.f32.xlu1 %v1043_v60  ;;  %v1218_v59 = vsel %vm941_vm9, %v1184_v55, -inf }
 0x233   : > { %961 = vmax.xlane.f32.xlu0 %v960_v62 }
 0x23a   : > { %1047 = vmax.xlane.f32.xlu2 %v1046_v3  ;;  %1293 = vmax.xlane.f32.xlu1 %v1292_v4  ;;  %v1102_v3 = vsel %vm2687_vm6, %v2936_v48, -inf  ;;  %v907_v4 = vpop.f32.mrf.mxu0 }
 0x23b   : > { %1210 = vmax.xlane.f32.xlu0 %v1209_v5  ;;  %v1304_v5 = vsel %vm941_vm9, %v1268_v0, -inf  ;;  %v2975_v7 = vadd.f32 %v2683_v33, %v907_v4  ;;  %v1138_v8 = vsel %vm941_vm9, %v1102_v3, -inf }
 0x23d   : > { %v1020_v17 = vsel %vm2691_vm7, %v2975_v7, -inf  ;;  %v1186_v24 = vsel %vm2719_vm15, %v2975_v7, -inf  ;;  %v1103_v25 = vsel %vm2687_vm6, %v2975_v7, -inf }
 0x23e   : > { %v1141_v39 = vsel %vm941_vm9, %v1103_v25, -inf }
 0x242   : > { %1296 = vmax.xlane.f32.xlu2 %v1295_v12  ;;  %964 = vmax.xlane.f32.xlu1 %v963_v13 }
 0x243   : > { %1130 = vmax.xlane.f32.xlu0 %v1129_v15  ;;  %v936_v15 = vsel %vm923_vm8, %v2975_v7, -inf }
 0x244   : > { %v975_v18 = vsel %vm941_vm9, %v936_v15, -inf }
 0x24a   : > { %967 = vmax.xlane.f32.xlu2 %v966_v19  ;;  %1213 = vmax.xlane.f32.xlu1 %v1212_v20  ;;  %v1221_v19 = vsel %vm941_vm9, %v1185_v16, -inf  ;;  %v1058_v20 = vsel %vm941_vm9, %v1020_v17, -inf }
 0x24b   : > { %1050 = vmax.xlane.f32.xlu0 %v1049_v21 }
 0x252   : > { %1216 = vmax.xlane.f32.xlu2 %v1215_v26  ;;  %1133 = vmax.xlane.f32.xlu1 %v1132_v27  ;;  %v910_v26 = vpop.f32.mrf.mxu0  ;;  %v1269_v27 = vsel %vm2715_vm14, %v2975_v7, -inf }
 0x253   : > { %1299 = vmax.xlane.f32.xlu0 %v1298_v30  ;;  %v1224_v30 = vsel %vm941_vm9, %v1186_v24, -inf  ;;  %v3012_v40 = vadd.f32 %v2683_v33, %v910_v26  ;;  %v1307_v41 = vsel %vm941_vm9, %v1269_v27, -inf }
 0x255   : > { %v2918_v31 = vpop.xlane.xlu2 %1109  ;;  %v2920_v37 = vpop.xlane.xlu1 %1026  ;;  %v1021_v53 = vsel %vm2691_vm7, %v3012_v40, -inf  ;;  %v937_v54 = vsel %vm923_vm8, %v3012_v40, -inf  ;;  %v1270_v16 = vsel %vm2715_vm14, %v3012_v40, -inf }
 0x256   : > { %v2922_v38 = vpop.xlane.xlu0 %943  ;;  %v978_v0 = vsel %vm941_vm9, %v937_v54, -inf  ;;  %v1310_v25 = vsel %vm941_vm9, %v1270_v16, -inf }
 0x25a   : > { %1136 = vmax.xlane.f32.xlu2 %v1135_v45  ;;  %1053 = vmax.xlane.f32.xlu1 %v1052_v47  ;;  %v912_v55 = vpop.f32.mrf.mxu0 }
 0x25b   : > { %970 = vmax.xlane.f32.xlu0 %v969_v9  ;;  %v1104_v9 = vsel %vm2687_vm6, %v3012_v40, -inf }
 0x25d   : > { %v2939_v49 = vpop.xlane.xlu2 %1029  ;;  %v2941_v50 = vpop.xlane.xlu1 %1275 }
 0x25e   : > { %v2943_v51 = vpop.xlane.xlu0 %1192 }
 0x262   : > { %1056 = vmax.xlane.f32.xlu2 %v1055_v56  ;;  %1302 = vmax.xlane.f32.xlu1 %v1301_v57  ;;  %v1144_v56 = vsel %vm941_vm9, %v1104_v9, -inf  ;;  %v1061_v57 = vsel %vm941_vm9, %v1021_v53, -inf  ;;  %v990_v9 = vsel %vm923_vm8, %v2922_v38, 0.0  ;;  %v915_v53 = vpop.f32.mrf.mxu0 }
 0x263   : > { %1219 = vmax.xlane.f32.xlu0 %v1218_v59  ;;  %v3029_v59 = vadd.f32 %v2683_v33, %v912_v55 }
 0x265   : > { %v2957_v60 = vpop.xlane.xlu2 %1278  ;;  %v2959_v62 = vpop.xlane.xlu1 %1195  ;;  %v1022_v15 = vsel %vm2691_vm7, %v3029_v59, -inf }
 0x266   : > { %v2961_v63 = vpop.xlane.xlu0 %946  ;;  %v1064_v24 = vsel %vm941_vm9, %v1022_v15, -inf  ;;  %v1188_v15 = vsel %vm2719_vm15, %v3029_v59, -inf }
 0x26a   : > { %1305 = vmax.xlane.f32.xlu2 %v1304_v5  ;;  %973 = vmax.xlane.f32.xlu1 %v972_v6 }
 0x26b   : > { %1139 = vmax.xlane.f32.xlu0 %v1138_v8 }
 0x26d   : > { %v2978_v29 = vpop.xlane.xlu2 %1198  ;;  %v2980_v12 = vpop.xlane.xlu1 %949 }
 0x26e   : > { %v2982_v13 = vpop.xlane.xlu0 %1112 }
 0x272   : > { %976 = vmax.xlane.f32.xlu2 %v975_v18  ;;  %1222 = vmax.xlane.f32.xlu1 %v1221_v19  ;;  %v1187_v18 = vsel %vm2719_vm15, %v3012_v40, -inf }
 0x273   : > { %1059 = vmax.xlane.f32.xlu0 %v1058_v20  ;;  %v1227_v26 = vsel %vm941_vm9, %v1187_v18, -inf }
 0x275   : > { %v1119_v21 = vpop.xlane.xlu2 %1118  ;;  %v2996_v22 = vpop.xlane.xlu1 %1115 }
 0x276   : > { %v2998_v23 = vpop.xlane.xlu0 %1032 }
 0x27a   : > { %1225 = vmax.xlane.f32.xlu2 %v1224_v30  ;;  %1142 = vmax.xlane.f32.xlu1 %v1141_v39 }
 0x27b   : > { %1308 = vmax.xlane.f32.xlu0 %v1307_v41  ;;  %v938_v41 = vsel %vm923_vm8, %v3029_v59, -inf }
 0x27c   : > { %v981_v55 = vsel %vm941_vm9, %v938_v41, -inf }
 0x27d   : > { %v956_v42 = vpop.xlane.xlu2 %955  ;;  %v953_v45 = vpop.xlane.xlu1 %952 }
 0x27e   : > { %v3015_v47 = vpop.xlane.xlu0 %1281  ;;  %v994_v1 = vsel %vm923_vm8, %v956_v42, 0.0  ;;  %v993_v4 = vsel %vm923_vm8, %v953_v45, 0.0  ;;  %v1105_v45 = vsel %vm2687_vm6, %v3029_v59, -inf }
 0x282   : > { %1145 = vmax.xlane.f32.xlu2 %v1144_v56  ;;  %1062 = vmax.xlane.f32.xlu1 %v1061_v57  ;;  %v3081_v56 = vadd.f32 %v2683_v33, %v915_v53  ;;  %v1147_v57 = vsel %vm941_vm9, %v1105_v45, -inf }
 0x283   : > { %979 = vmax.xlane.f32.xlu0 %v978_v0  ;;  %v1073_v0 = vsel %vm2691_vm7, %v2920_v37, %v990_v9  ;;  %v917_v9 = vpop.f32.mrf.mxu0 }
 0x284   : > { %v1156_v38 = vsel %vm2687_vm6, %v2918_v31, %v1073_v0  ;;  %v1106_v45 = vsel %vm2687_vm6, %v3081_v56, -inf  ;;  %v1272_v53 = vsel %vm2715_vm14, %v3081_v56, -inf }
 0x285   : > { %v1039_v3 = vpop.xlane.xlu2 %1038  ;;  %v1036_v6 = vpop.xlane.xlu1 %1035  ;;  %v1239_v37 = vsel %vm2719_vm15, %v2943_v51, %v1156_v38  ;;  %v3142_v38 = vadd.f32 %v2683_v33, %v917_v9 }
 0x286   : > { %v1077_v5 = vsel %vm2691_vm7, %v1039_v3, %v994_v1  ;;  %v3038_v8 = vpop.xlane.xlu0 %1201  ;;  %v1076_v17 = vsel %vm2691_vm7, %v1036_v6, %v993_v4  ;;  %v939_v6 = vsel %vm923_vm8, %v3081_v56, -inf  ;;  %v1322_v51 = vsel %vm2715_vm14, %v2941_v50, %v1239_v37 }
 0x287   : > { %v3053_v19 = vsel %vm2687_vm6, %v1119_v21, %v1076_v17  ;;  %v1271_v21 = vsel %vm2715_vm14, %v3029_v59, -inf  ;;  %v1023_v17 = vsel %vm2691_vm7, %v3081_v56, -inf  ;;  %v1107_v33 = vsel %vm2687_vm6, %v3142_v38, -inf }
 0x288   : > { %v1242_v20 = vsel %vm2719_vm15, %v3038_v8, %v3053_v19  ;;  %v1313_v54 = vsel %vm941_vm9, %v1271_v21, -inf  ;;  %v1024_v37 = vsel %vm2691_vm7, %v3142_v38, -inf }
 0x28a   : > { %1065 = vmax.xlane.f32.xlu2 %v1064_v24  ;;  %1311 = vmax.xlane.f32.xlu1 %v1310_v25  ;;  %v984_v24 = vsel %vm941_vm9, %v939_v6, -inf  ;;  %v1230_v25 = vsel %vm941_vm9, %v1188_v15, -inf }
 0x28b   : > { %1228 = vmax.xlane.f32.xlu0 %v1227_v26  ;;  %v1067_v26 = vsel %vm941_vm9, %v1023_v17, -inf  ;;  %v1153_v17 = vsel %vm941_vm9, %v1107_v33, -inf }
 0x28d   : > { %v1288_v27 = vpop.xlane.xlu2 %1287  ;;  %v3062_v30 = vpop.xlane.xlu1 %1284 }
 0x28e   : > { %v1122_v39 = vpop.xlane.xlu0 %1121 }
 0x28f   : > { %v1160_v42 = vsel %vm2687_vm6, %v1122_v39, %v1077_v5  ;;  %v1338_v39 = vsub.f32 %v2697_v36, %v1322_v51  ;;  %v991_v36 = vsel %vm923_vm8, %v2961_v63, 0.0 }
 0x290   : > { %v1074_v63 = vsel %vm2691_vm7, %v2939_v49, %v991_v36 }
 0x292   : > { %1314 = vmax.xlane.f32.xlu2 %v1313_v54  ;;  %982 = vmax.xlane.f32.xlu1 %v981_v55  ;;  %v1354_v55 = vmul.f32 1.442695, %v1338_v39 }
 0x293   : > { %1148 = vmax.xlane.f32.xlu0 %v1147_v57 }
 0x294   : > { %2320 = vpow2.f32 %v1354_v55 }
 0x295   : > { %v959_v1 = vpop.xlane.xlu2 %958  ;;  %v1205_v4 = vpop.xlane.xlu1 %1204 }
 0x296   : > { %v995_v3 = vsel %vm923_vm8, %v959_v1, 0.0  ;;  %v1042_v5 = vpop.xlane.xlu0 %1041  ;;  %v1243_v31 = vsel %vm2719_vm15, %v1205_v4, %v1160_v42  ;;  %v1150_v1 = vsel %vm941_vm9, %v1106_v45, -inf  ;;  %v1157_v4 = vsel %vm2687_vm6, %v2982_v13, %v1074_v63 }
 0x297   : > { %v1078_v16 = vsel %vm2691_vm7, %v1042_v5, %v995_v3  ;;  %v3110_v18 = vsel %vm2715_vm14, %v1288_v27, %v1243_v31  ;;  %v1189_v27 = vsel %vm2719_vm15, %v3081_v56, -inf  ;;  %v1316_v3 = vsel %vm941_vm9, %v1272_v53, -inf }
 0x298   : > { %v1233_v0 = vsel %vm941_vm9, %v1189_v27, -inf  ;;  %v1240_v49 = vsel %vm2719_vm15, %v2959_v62, %v1157_v4  ;;  %v940_v13 = vsel %vm923_vm8, %v3142_v38, -inf  ;;  %v992_v62 = vsel %vm923_vm8, %v2980_v12, 0.0 }
 0x299   : > { %v1323_v51 = vsel %vm2715_vm14, %v2957_v60, %v1240_v49  ;;  %v1273_v45 = vsel %vm2715_vm14, %v3142_v38, -inf }
 0x29a   : > { %985 = vmax.xlane.f32.xlu2 %v984_v24  ;;  %1231 = vmax.xlane.f32.xlu1 %v1230_v25  ;;  %v1070_v24 = vsel %vm941_vm9, %v1024_v37, -inf  ;;  %v3178_v39 = vpop.eup %2320  ;;  %v1319_v36 = vsel %vm941_vm9, %v1273_v45, -inf }
 0x29b   : > { %1068 = vmax.xlane.f32.xlu0 %v1067_v26  ;;  %v987_v26 = vsel %vm941_vm9, %v940_v13, -inf  ;;  %v1386_v9 = vsel %vm923_vm8, %v3178_v39, 0.0 }
 0x29d   : > { %v1208_v21 = vpop.xlane.xlu2 %1207  ;;  %v1125_v41 = vpop.xlane.xlu1 %1124 }
 0x29e   : > { %v1291_v42 = vpop.xlane.xlu0 %1290  ;;  %v1161_v50 = vsel %vm2687_vm6, %v1125_v41, %v1078_v16  ;;  %v1339_v41 = vsub.f32 %v2724_v46, %v1323_v51  ;;  %v1190_v46 = vsel %vm2719_vm15, %v3142_v38, -inf }
 0x29f   : > { %v1244_v54 = vsel %vm2719_vm15, %v1208_v21, %v1161_v50  ;;  %v1075_v21 = vsel %vm2691_vm7, %v2998_v23, %v992_v62 }
 0x2a0   : > { %v3137_v57 = vsel %vm2715_vm14, %v1291_v42, %v1244_v54  ;;  %v1158_v12 = vsel %vm2687_vm6, %v2996_v22, %v1075_v21  ;;  %v1356_v50 = vmul.f32 1.442695, %v1339_v41  ;;  %v1402_v54 = vsel %vm941_vm9, %v1386_v9, 0.0 }
 0x2a1   : > { %v1241_v53 = vsel %vm2719_vm15, %v2978_v29, %v1158_v12  ;;  %v1546_v29 = vsel %vm2687_vm6, %v3178_v39, 0.0  ;;  %v1706_v41 = vsel %vm2715_vm14, %v3178_v39, 0.0 }
 0x2a2   : > { %1234 = vmax.xlane.f32.xlu2 %v1233_v0  ;;  %1151 = vmax.xlane.f32.xlu1 %v1150_v1  ;;  %v1324_v55 = vsel %vm2715_vm14, %v3015_v47, %v1241_v53  ;;  %v1236_v0 = vsel %vm941_vm9, %v1190_v46, -inf  ;;  %2322 = vpow2.f32 %v1356_v50  ;;  %v1562_v37 = vsel %vm941_vm9, %v1546_v29, 0.0 }
 0x2a3   : > { %1317 = vmax.xlane.f32.xlu0 %v1316_v3  ;;  %v1340_v1 = vsub.f32 %v2750_v58, %v1324_v55  ;;  %v1722_v45 = vsel %vm941_vm9, %v1706_v41, 0.0 }
 0x2a5   : > { %v1128_v5 = vpop.xlane.xlu2 %1127  ;;  %v1045_v6 = vpop.xlane.xlu1 %1044 }
 0x2a6   : > { %v962_v15 = vpop.xlane.xlu0 %961 }
 0x2a7   : > { %v996_v31 = vsel %vm923_vm8, %v962_v15, 0.0  ;;  %v1358_v15 = vmul.f32 1.442695, %v1340_v1 }
 0x2a8   : > { %v1079_v16 = vsel %vm2691_vm7, %v1045_v6, %v996_v31  ;;  %v1466_v6 = vsel %vm2691_vm7, %v3178_v39, 0.0  ;;  %v3230_v13 = vpop.eup %2322 }
 0x2a9   : > { %v1162_v25 = vsel %vm2687_vm6, %v1128_v5, %v1079_v16  ;;  %v1626_v5 = vsel %vm2719_vm15, %v3178_v39, 0.0  ;;  %v1482_v31 = vsel %vm941_vm9, %v1466_v6, 0.0  ;;  %2324 = vpow2.f32 %v1358_v15 }
 0x2aa   : > { %1154 = vmax.xlane.f32.xlu2 %v1153_v17  ;;  %1071 = vmax.xlane.f32.xlu1 %v1070_v24  ;;  %v1642_v49 = vsel %vm941_vm9, %v1626_v5, 0.0  ;;  %v1547_v62 = vsel %vm2687_vm6, %v3230_v13, 0.0  ;;  %v1467_v51 = vsel %vm2691_vm7, %v3230_v13, 0.0  ;;  %v1707_v8 = vsel %vm2715_vm14, %v3230_v13, 0.0 }
 0x2ab   : > { %988 = vmax.xlane.f32.xlu0 %v987_v26  ;;  %v1565_v12 = vsel %vm941_vm9, %v1547_v62, 0.0  ;;  %v1725_v55 = vsel %vm941_vm9, %v1707_v8, 0.0  ;;  %v1627_v6 = vsel %vm2719_vm15, %v3230_v13, 0.0 }
 0x2ad   : > { %v1048_v42 = vpop.xlane.xlu2 %1047  ;;  %v1294_v27 = vpop.xlane.xlu1 %1293 }
 0x2ae   : > { %v1211_v60 = vpop.xlane.xlu0 %1210 }
 0x2af   : > { %v1245_v23 = vsel %vm2719_vm15, %v1211_v60, %v1162_v25  ;;  %v1325_v60 = vsel %vm2715_vm14, %v3062_v30, %v1242_v20  ;;  %v3262_v9 = vpop.eup %2324  ;;  %v1387_v30 = vsel %vm923_vm8, %v3230_v13, 0.0 }
 0x2b0   : > { %v3200_v22 = vsel %vm2715_vm14, %v1294_v27, %v1245_v23  ;;  %v1485_v27 = vsel %vm941_vm9, %v1467_v51, 0.0  ;;  %v1341_v23 = vsub.f32 %v2765_v2, %v1325_v60  ;;  %v1468_v19 = vsel %vm2691_vm7, %v3262_v9, 0.0 }
 0x2b1   : > { %v1405_v1 = vsel %vm941_vm9, %v1387_v30, 0.0  ;;  %v1708_v29 = vsel %vm2715_vm14, %v3262_v9, 0.0  ;;  %v1388_v5 = vsel %vm923_vm8, %v3262_v9, 0.0  ;;  %v1628_v62 = vsel %vm2719_vm15, %v3262_v9, 0.0 }
 0x2b2   : > { %1320 = vmax.xlane.f32.xlu1 %v1319_v36  ;;  %1403 = vadd.xlane.f32.xlu2 %v1402_v54  ;;  %v1360_v36 = vmul.f32 1.442695, %v1341_v23  ;;  %v1728_v15 = vsel %vm941_vm9, %v1708_v29, 0.0  ;;  %v1648_v41 = vsel %vm941_vm9, %v1628_v62, 0.0  ;;  %v1343_v60 = vsub.f32 %v2819_v34, %v3137_v57 }
 0x2b3   : > { %1237 = vmax.xlane.f32.xlu0 %v1236_v0  ;;  %v1488_v0 = vsel %vm941_vm9, %v1468_v19, 0.0 }
 0x2b4   : > { %2326 = vpow2.f32 %v1360_v36  ;;  %v1364_v57 = vmul.f32 1.442695, %v1343_v60 }
 0x2b5   : > { %v1297_v3 = vpop.xlane.xlu2 %1296  ;;  %v965_v63 = vpop.xlane.xlu1 %964 }
 0x2b6   : > { %v1131_v4 = vpop.xlane.xlu0 %1130  ;;  %v997_v47 = vsel %vm923_vm8, %v965_v63, 0.0 }
 0x2b7   : > { %v1080_v58 = vsel %vm2691_vm7, %v1048_v42, %v997_v47 }
 0x2b8   : > { %v1163_v33 = vsel %vm2687_vm6, %v1131_v4, %v1080_v58 }
 0x2ba   : > { %1563 = vadd.xlane.f32.xlu1 %v1562_v37  ;;  %1643 = vadd.xlane.f32.xlu2 %v1642_v49  ;;  %v1645_v49 = vsel %vm941_vm9, %v1627_v6, 0.0 }
 0x2bb   : > { %1483 = vadd.xlane.f32.xlu0 %v1482_v31  ;;  %v3303_v31 = vpop.eup %2326 }
 0x2bc   : > { %v1389_v51 = vsel %vm923_vm8, %v3303_v31, 0.0  ;;  %v1469_v19 = vsel %vm2691_vm7, %v3303_v31, 0.0  ;;  %v1709_v6 = vsel %vm2715_vm14, %v3303_v31, 0.0 }
 0x2bd   : > { %v968_v16 = vpop.xlane.xlu2 %967  ;;  %v1214_v24 = vpop.xlane.xlu1 %1213  ;;  %v1491_v36 = vsel %vm941_vm9, %v1469_v19, 0.0 }
 0x2be   : > { %v998_v17 = vsel %vm923_vm8, %v968_v16, 0.0  ;;  %v1051_v25 = vpop.xlane.xlu0 %1050  ;;  %v1246_v26 = vsel %vm2719_vm15, %v1214_v24, %v1163_v33  ;;  %v1408_v33 = vsel %vm941_vm9, %v1388_v5, 0.0  ;;  %v1342_v16 = vsub.f32 %v2780_v11, %v3110_v18 }
 0x2bf   : > { %v1081_v21 = vsel %vm2691_vm7, %v1051_v25, %v998_v17  ;;  %v3249_v42 = vsel %vm2715_vm14, %v1297_v3, %v1246_v26 }
 0x2c0   : > { %v1362_v18 = vmul.f32 1.442695, %v1342_v16  ;;  %v1344_v16 = vsub.f32 %v2846_v52, %v3200_v22 }
 0x2c2   : > { %1566 = vadd.xlane.f32.xlu2 %v1565_v12  ;;  %1486 = vadd.xlane.f32.xlu1 %v1485_v27  ;;  %v1411_v12 = vsel %vm941_vm9, %v1389_v51, 0.0  ;;  %2328 = vpow2.f32 %v1362_v18  ;;  %v1366_v22 = vmul.f32 1.442695, %v1344_v16 }
 0x2c3   : > { %1723 = vadd.xlane.f32.xlu0 %v1722_v45  ;;  %2330 = vpow2.f32 %v1364_v57 }
 0x2c4   : > { %2332 = vpow2.f32 %v1366_v22 }
 0x2c5   : > { %v1217_v46 = vpop.xlane.xlu2 %1216  ;;  %v1134_v50 = vpop.xlane.xlu1 %1133 }
 0x2c6   : > { %v1300_v53 = vpop.xlane.xlu0 %1299  ;;  %v1164_v20 = vsel %vm2687_vm6, %v1134_v50, %v1081_v21  ;;  %v1548_v21 = vsel %vm2687_vm6, %v3262_v9, 0.0  ;;  %v1549_v50 = vsel %vm2687_vm6, %v3303_v31, 0.0 }
 0x2c7   : > { %v1247_v2 = vsel %vm2719_vm15, %v1217_v46, %v1164_v20  ;;  %v1568_v27 = vsel %vm941_vm9, %v1548_v21, 0.0  ;;  %v1571_v30 = vsel %vm941_vm9, %v1549_v50, 0.0 }
 0x2c8   : > { %v3280_v54 = vsel %vm2715_vm14, %v1300_v53, %v1247_v2  ;;  %v1629_v53 = vsel %vm2719_vm15, %v3303_v31, 0.0 }
 0x2c9   : > { %v1651_v2 = vsel %vm941_vm9, %v1629_v53, 0.0 }
 0x2ca   : > { %1726 = vadd.xlane.f32.xlu1 %v1725_v55  ;;  %1489 = vadd.xlane.f32.xlu2 %v1488_v0  ;;  %v3345_v55 = vpop.eup %2328 }
 0x2cb   : > { %1406 = vadd.xlane.f32.xlu0 %v1405_v1  ;;  %v1470_v29 = vsel %vm2691_vm7, %v3345_v55, 0.0  ;;  %v1710_v62 = vsel %vm2715_vm14, %v3345_v55, 0.0  ;;  %v1390_v21 = vsel %vm923_vm8, %v3345_v55, 0.0 }
 0x2cd   : > { %v1137_v3 = vpop.xlane.xlu2 %1136  ;;  %v1054_v63 = vpop.xlane.xlu1 %1053 }
 0x2ce   : > { %v971_v4 = vpop.xlane.xlu0 %970 }
 0x2cf   : > { %v999_v47 = vsel %vm923_vm8, %v971_v4, 0.0  ;;  %v1550_v4 = vsel %vm2687_vm6, %v3345_v55, 0.0 }
 0x2d0   : > { %v1082_v58 = vsel %vm2691_vm7, %v1054_v63, %v999_v47 }
 0x2d1   : > { %v1165_v37 = vsel %vm2687_vm6, %v1137_v3, %v1082_v58 }
 0x2d2   : > { %1729 = vadd.xlane.f32.xlu2 %v1728_v15  ;;  %1409 = vadd.xlane.f32.xlu1 %v1408_v33  ;;  %v1574_v15 = vsel %vm941_vm9, %v1550_v4, 0.0  ;;  %v1494_v33 = vsel %vm941_vm9, %v1470_v29, 0.0 }
 0x2d3   : > { %1646 = vadd.xlane.f32.xlu0 %v1645_v49  ;;  %v3369_v49 = vpop.eup %2330 }
 0x2d4   : > { %v1471_v51 = vsel %vm2691_vm7, %v3369_v49, 0.0  ;;  %v1391_v50 = vsel %vm923_vm8, %v3369_v49, 0.0 }
 0x2d5   : > { %v1057_v17 = vpop.xlane.xlu2 %1056  ;;  %v1303_v24 = vpop.xlane.xlu1 %1302  ;;  %v1417_v57 = vsel %vm941_vm9, %v1391_v50, 0.0 }
 0x2d6   : > { %v1220_v25 = vpop.xlane.xlu0 %1219 }
 0x2d7   : > { %v1248_v26 = vsel %vm2719_vm15, %v1220_v25, %v1165_v37  ;;  %v1731_v37 = vsel %vm941_vm9, %v1709_v6, 0.0 }
 0x2d8   : > { %v3320_v11 = vsel %vm2715_vm14, %v1303_v24, %v1248_v26 }
 0x2da   : > { %1649 = vadd.xlane.f32.xlu1 %v1648_v41  ;;  %1412 = vadd.xlane.f32.xlu2 %v1411_v12  ;;  %v1734_v41 = vsel %vm941_vm9, %v1710_v62, 0.0  ;;  %v1497_v12 = vsel %vm941_vm9, %v1471_v51, 0.0 }
 0x2db   : > { %1569 = vadd.xlane.f32.xlu0 %v1568_v27  ;;  %v1414_v27 = vsel %vm941_vm9, %v1390_v21, 0.0 }
 0x2dd   : > { %v1306_v45 = vpop.xlane.xlu2 %1305  ;;  %v974_v23 = vpop.xlane.xlu1 %973 }
 0x2de   : > { %v1140_v46 = vpop.xlane.xlu0 %1139  ;;  %v1000_v8 = vsel %vm923_vm8, %v974_v23, 0.0 }
 0x2df   : > { %v1083_v34 = vsel %vm2691_vm7, %v1057_v17, %v1000_v8  ;;  %v1630_v8 = vsel %vm2719_vm15, %v3345_v55, 0.0 }
 0x2e0   : > { %v1166_v20 = vsel %vm2687_vm6, %v1140_v46, %v1083_v34  ;;  %v1711_v46 = vsel %vm2715_vm14, %v3369_v49, 0.0 }
 0x2e1   : > { %v1737_v34 = vsel %vm941_vm9, %v1711_v46, 0.0 }
 0x2e2   : > { %1572 = vadd.xlane.f32.xlu1 %v1571_v30  ;;  %1652 = vadd.xlane.f32.xlu2 %v1651_v2  ;;  %v1654_v30 = vsel %vm941_vm9, %v1630_v8, 0.0  ;;  %v3411_v2 = vpop.eup %2332 }
 0x2e3   : > { %1492 = vadd.xlane.f32.xlu0 %v1491_v36  ;;  %v1345_v36 = vsub.f32 %v2861_v61, %v3249_v42  ;;  %v1392_v4 = vsel %vm923_vm8, %v3411_v2, 0.0  ;;  %v1472_v51 = vsel %vm2691_vm7, %v3411_v2, 0.0  ;;  %v1712_v8 = vsel %vm2715_vm14, %v3411_v2, 0.0 }
 0x2e4   : > { %v1420_v6 = vsel %vm941_vm9, %v1392_v4, 0.0  ;;  %v1500_v22 = vsel %vm941_vm9, %v1472_v51, 0.0 }
 0x2e5   : > { %v977_v0 = vpop.xlane.xlu2 %976  ;;  %v1223_v3 = vpop.xlane.xlu1 %1222  ;;  %v1368_v42 = vmul.f32 1.442695, %v1345_v36  ;;  %v1347_v36 = vsub.f32 %v2915_v28, %v3320_v11 }
 0x2e6   : > { %v1001_v1 = vsel %vm923_vm8, %v977_v0, 0.0  ;;  %v1060_v63 = vpop.xlane.xlu0 %1059  ;;  %v1249_v5 = vsel %vm2719_vm15, %v1223_v3, %v1166_v20 }
 0x2e7   : > { %v1084_v47 = vsel %vm2691_vm7, %v1060_v63, %v1001_v1  ;;  %v3364_v58 = vsel %vm2715_vm14, %v1306_v45, %v1249_v5  ;;  %v1631_v63 = vsel %vm2719_vm15, %v3369_v49, 0.0  ;;  %v1551_v5 = vsel %vm2687_vm6, %v3369_v49, 0.0 }
 0x2e8   : > { %2334 = vpow2.f32 %v1368_v42  ;;  %v1372_v11 = vmul.f32 1.442695, %v1347_v36 }
 0x2ea   : > { %1575 = vadd.xlane.f32.xlu2 %v1574_v15  ;;  %1495 = vadd.xlane.f32.xlu1 %v1494_v33  ;;  %v1577_v15 = vsel %vm941_vm9, %v1551_v5, 0.0  ;;  %v1346_v33 = vsub.f32 %v2888_v14, %v3280_v54 }
 0x2eb   : > { %1732 = vadd.xlane.f32.xlu0 %v1731_v37 }
 0x2ec   : > { %v1370_v54 = vmul.f32 1.442695, %v1346_v33 }
 0x2ed   : > { %v1226_v17 = vpop.xlane.xlu2 %1225  ;;  %v1143_v24 = vpop.xlane.xlu1 %1142 }
 0x2ee   : > { %v1309_v25 = vpop.xlane.xlu0 %1308  ;;  %v1167_v26 = vsel %vm2687_vm6, %v1143_v24, %v1084_v47  ;;  %v1657_v47 = vsel %vm941_vm9, %v1631_v63, 0.0  ;;  %v1552_v24 = vsel %vm2687_vm6, %v3411_v2, 0.0  ;;  %2336 = vpow2.f32 %v1370_v54 }
 0x2ef   : > { %v1250_v52 = vsel %vm2719_vm15, %v1226_v17, %v1167_v26  ;;  %v1580_v21 = vsel %vm941_vm9, %v1552_v24, 0.0  ;;  %2338 = vpow2.f32 %v1372_v11 }
 0x2f0   : > { %v3388_v18 = vsel %vm2715_vm14, %v1309_v25, %v1250_v52  ;;  %v1632_v25 = vsel %vm2719_vm15, %v3411_v2, 0.0 }
 0x2f1   : > { %v1660_v52 = vsel %vm941_vm9, %v1632_v25, 0.0 }
 0x2f2   : > { %1735 = vadd.xlane.f32.xlu1 %v1734_v41  ;;  %1498 = vadd.xlane.f32.xlu2 %v1497_v12  ;;  %v3453_v41 = vpop.eup %2334 }
 0x2f3   : > { %1415 = vadd.xlane.f32.xlu0 %v1414_v27  ;;  %v1473_v46 = vsel %vm2691_vm7, %v3453_v41, 0.0  ;;  %v1713_v63 = vsel %vm2715_vm14, %v3453_v41, 0.0  ;;  %v1393_v5 = vsel %vm923_vm8, %v3453_v41, 0.0 }
 0x2f5   : > { %v1146_v60 = vpop.xlane.xlu2 %1145  ;;  %v1063_v45 = vpop.xlane.xlu1 %1062 }
 0x2f6   : > { %v980_v23 = vpop.xlane.xlu0 %979 }
 0x2f7   : > { %v1002_v53 = vsel %vm923_vm8, %v980_v23, 0.0  ;;  %v1553_v23 = vsel %vm2687_vm6, %v3453_v41, 0.0 }
 0x2f8   : > { %v1085_v19 = vsel %vm2691_vm7, %v1063_v45, %v1002_v53 }
 0x2f9   : > { %v1168_v20 = vsel %vm2687_vm6, %v1146_v60, %v1085_v19 }
 0x2fa   : > { %1738 = vadd.xlane.f32.xlu2 %v1737_v34  ;;  %1418 = vadd.xlane.f32.xlu1 %v1417_v57  ;;  %v1583_v34 = vsel %vm941_vm9, %v1553_v23, 0.0  ;;  %v1503_v57 = vsel %vm941_vm9, %v1473_v46, 0.0 }
 0x2fb   : > { %1655 = vadd.xlane.f32.xlu0 %v1654_v30  ;;  %v3477_v30 = vpop.eup %2336 }
 0x2fc   : > { %v1474_v4 = vsel %vm2691_vm7, %v3477_v30, 0.0  ;;  %v1394_v24 = vsel %vm923_vm8, %v3477_v30, 0.0  ;;  %v1554_v46 = vsel %vm2687_vm6, %v3477_v30, 0.0 }
 0x2fd   : > { %v1066_v0 = vpop.xlane.xlu2 %1065  ;;  %v1312_v1 = vpop.xlane.xlu1 %1311  ;;  %v1426_v54 = vsel %vm941_vm9, %v1394_v24, 0.0 }
 0x2fe   : > { %v1229_v3 = vpop.xlane.xlu0 %1228 }
 0x2ff   : > { %v1251_v29 = vsel %vm2719_vm15, %v1229_v3, %v1168_v20  ;;  %v1740_v20 = vsel %vm941_vm9, %v1712_v8, 0.0  ;;  %v1349_v8 = vsub.f32 %v2975_v7, %v3388_v18 }
 0x300   : > { %v3428_v61 = vsel %vm2715_vm14, %v1312_v1, %v1251_v29 }
 0x301   : > { %v1376_v18 = vmul.f32 1.442695, %v1349_v8 }
 0x302   : > { %1658 = vadd.xlane.f32.xlu1 %v1657_v47  ;;  %1421 = vadd.xlane.f32.xlu2 %v1420_v6  ;;  %v1743_v47 = vsel %vm941_vm9, %v1713_v63, 0.0  ;;  %v1506_v6 = vsel %vm941_vm9, %v1474_v4, 0.0 }
 0x303   : > { %1578 = vadd.xlane.f32.xlu0 %v1577_v15  ;;  %v1423_v15 = vsel %vm941_vm9, %v1393_v5, 0.0 }
 0x305   : > { %v1315_v37 = vpop.xlane.xlu2 %1314  ;;  %v983_v16 = vpop.xlane.xlu1 %982 }
 0x306   : > { %v1149_v17 = vpop.xlane.xlu0 %1148  ;;  %v1003_v62 = vsel %vm923_vm8, %v983_v16, 0.0 }
 0x307   : > { %v1086_v14 = vsel %vm2691_vm7, %v1066_v0, %v1003_v62  ;;  %v1633_v62 = vsel %vm2719_vm15, %v3453_v41, 0.0 }
 0x308   : > { %v1169_v26 = vsel %vm2687_vm6, %v1149_v17, %v1086_v14  ;;  %v1714_v17 = vsel %vm2715_vm14, %v3477_v30, 0.0 }
 0x309   : > { %v1746_v14 = vsel %vm941_vm9, %v1714_v17, 0.0 }
 0x30a   : > { %1581 = vadd.xlane.f32.xlu1 %v1580_v21  ;;  %1661 = vadd.xlane.f32.xlu2 %v1660_v52  ;;  %v1663_v21 = vsel %vm941_vm9, %v1633_v62, 0.0  ;;  %v3521_v52 = vpop.eup %2338 }
 0x30b   : > { %1501 = vadd.xlane.f32.xlu0 %v1500_v22  ;;  %v1348_v22 = vsub.f32 %v2936_v48, %v3364_v58  ;;  %v1395_v23 = vsel %vm923_vm8, %v3521_v52, 0.0  ;;  %v1555_v36 = vsel %vm2687_vm6, %v3521_v52, 0.0  ;;  %v1715_v17 = vsel %vm2715_vm14, %v3521_v52, 0.0 }
 0x30c   : > { %v1429_v58 = vsel %vm941_vm9, %v1395_v23, 0.0  ;;  %v1589_v63 = vsel %vm941_vm9, %v1555_v36, 0.0  ;;  %v1749_v62 = vsel %vm941_vm9, %v1715_v17, 0.0 }
 0x30d   : > { %v986_v12 = vpop.xlane.xlu2 %985  ;;  %v1232_v60 = vpop.xlane.xlu1 %1231 }
 0x30e   : > { %v1004_v27 = vsel %vm923_vm8, %v986_v12, 0.0  ;;  %v1069_v45 = vpop.xlane.xlu0 %1068  ;;  %v1252_v50 = vsel %vm2719_vm15, %v1232_v60, %v1169_v26 }
 0x30f   : > { %v1087_v53 = vsel %vm2691_vm7, %v1069_v45, %v1004_v27  ;;  %v3472_v19 = vsel %vm2715_vm14, %v1315_v37, %v1252_v50  ;;  %v1634_v45 = vsel %vm2719_vm15, %v3477_v30, 0.0  ;;  %v1374_v50 = vmul.f32 1.442695, %v1348_v22 }
 0x310   : > { %v1666_v48 = vsel %vm941_vm9, %v1634_v45, 0.0 }
 0x311   : > { %2340 = vpow2.f32 %v1374_v50 }
 0x312   : > { %1584 = vadd.xlane.f32.xlu2 %v1583_v34  ;;  %1504 = vadd.xlane.f32.xlu1 %v1503_v57  ;;  %2342 = vpow2.f32 %v1376_v18 }
 0x313   : > { %1741 = vadd.xlane.f32.xlu0 %v1740_v20 }
 0x315   : > { %v1235_v0 = vpop.xlane.xlu2 %1234  ;;  %v1152_v1 = vpop.xlane.xlu1 %1151 }
 0x316   : > { %v1318_v3 = vpop.xlane.xlu0 %1317  ;;  %v1170_v29 = vsel %vm2687_vm6, %v1152_v1, %v1087_v53  ;;  %v1586_v53 = vsel %vm941_vm9, %v1554_v46, 0.0 }
 0x317   : > { %v1253_v28 = vsel %vm2719_vm15, %v1235_v0, %v1170_v29  ;;  %v1635_v0 = vsel %vm2719_vm15, %v3521_v52, 0.0  ;;  %v3559_v5 = vpop.eup %2340 }
 0x318   : > { %v3496_v42 = vsel %vm2715_vm14, %v1318_v3, %v1253_v28  ;;  %v1475_v3 = vsel %vm2691_vm7, %v3521_v52, 0.0  ;;  %v1669_v4 = vsel %vm941_vm9, %v1635_v0, 0.0  ;;  %v1716_v45 = vsel %vm2715_vm14, %v3559_v5, 0.0 }
 0x319   : > { %v1509_v29 = vsel %vm941_vm9, %v1475_v3, 0.0  ;;  %v1396_v50 = vsel %vm923_vm8, %v3559_v5, 0.0 }
 0x31a   : > { %1744 = vadd.xlane.f32.xlu1 %v1743_v47  ;;  %1507 = vadd.xlane.f32.xlu2 %v1506_v6 }
 0x31b   : > { %1424 = vadd.xlane.f32.xlu0 %v1423_v15 }
 0x31d   : > { %v1155_v33 = vpop.xlane.xlu2 %1154  ;;  %v1072_v37 = vpop.xlane.xlu1 %1071 }
 0x31e   : > { %v989_v16 = vpop.xlane.xlu0 %988 }
 0x31f   : > { %v1005_v25 = vsel %vm923_vm8, %v989_v16, 0.0 }
 0x320   : > { %v1088_v51 = vsel %vm2691_vm7, %v1072_v37, %v1005_v25  ;;  %v1476_v37 = vsel %vm2691_vm7, %v3559_v5, 0.0 }
 0x321   : > { %v3518_v26 = vsel %vm2687_vm6, %v1155_v33, %v1088_v51  ;;  %v1556_v33 = vsel %vm2687_vm6, %v3559_v5, 0.0  ;;  %v1512_v25 = vsel %vm941_vm9, %v1476_v37, 0.0  ;;  %v3579_v51 = vpop.eup %2342 }
 0x322   : > { %1747 = vadd.xlane.f32.xlu2 %v1746_v14  ;;  %1427 = vadd.xlane.f32.xlu1 %v1426_v54  ;;  %v1592_v24 = vsel %vm941_vm9, %v1556_v33, 0.0  ;;  %v1350_v14 = vsub.f32 %v3012_v40, %v3428_v61  ;;  %v1477_v23 = vsel %vm2691_vm7, %v3579_v51, 0.0 }
 0x323   : > { %1664 = vadd.xlane.f32.xlu0 %v1663_v21 }
 0x324   : > { %v1378_v61 = vmul.f32 1.442695, %v1350_v14 }
 0x325   : > { %v1404_v12 = vpop.xlane.xlu2 %1403  ;;  %v3525_v27 = vpop.xlane.xlu1 %1320 }
 0x326   : > { %v3527_v60 = vpop.xlane.xlu0 %1237  ;;  %v1450_v1 = vsel %vm923_vm8, %v1404_v12, 1.0 }
 0x32a   : > { %1667 = vadd.xlane.f32.xlu1 %v1666_v48  ;;  %1430 = vadd.xlane.f32.xlu2 %v1429_v58  ;;  %v1752_v58 = vsel %vm941_vm9, %v1716_v45, 0.0 }
 0x32b   : > { %1587 = vadd.xlane.f32.xlu0 %v1586_v53  ;;  %v1515_v53 = vsel %vm941_vm9, %v1477_v23, 0.0 }
 0x32d   : > { %v1644_v34 = vpop.xlane.xlu2 %1643  ;;  %v1564_v57 = vpop.xlane.xlu1 %1563 }
 0x32e   : > { %v1484_v20 = vpop.xlane.xlu0 %1483 }
 0x32f   : > { %v1530_v7 = vsel %vm2691_vm7, %v1484_v20, %v1450_v1 }
 0x330   : > { %v1610_v28 = vsel %vm2687_vm6, %v1564_v57, %v1530_v7 }
 0x331   : > { %v1690_v6 = vsel %vm2719_vm15, %v1644_v34, %v1610_v28  ;;  %v1432_v34 = vsel %vm941_vm9, %v1396_v50, 0.0 }
 0x332   : > { %1590 = vadd.xlane.f32.xlu1 %v1589_v63  ;;  %1670 = vadd.xlane.f32.xlu2 %v1669_v4  ;;  %v1717_v4 = vsel %vm2715_vm14, %v3579_v51, 0.0 }
 0x333   : > { %1510 = vadd.xlane.f32.xlu0 %v1509_v29  ;;  %v1397_v29 = vsel %vm923_vm8, %v3579_v51, 0.0  ;;  %v1755_v37 = vsel %vm941_vm9, %v1717_v4, 0.0 }
 0x335   : > { %v1567_v11 = vpop.xlane.xlu2 %1566  ;;  %v1487_v47 = vpop.xlane.xlu1 %1486 }
 0x336   : > { %v1724_v15 = vpop.xlane.xlu0 %1723 }
 0x337   : > { %v1770_v16 = vsel %vm2715_vm14, %v1724_v15, %v1690_v6  ;;  %v1636_v6 = vsel %vm2719_vm15, %v3559_v5, 0.0 }
 0x338   : > { %2344 = vrcp.f32 %v1770_v16  ;;  %v1797_v8 = vand.u32 2147483648, %v1770_v16  ;;  %v1795_v20 = vand.u32 2147483647, %v1770_v16  ;;  %vm1791_vm1 = vweird.f32 %v1770_v16 }
 0x339   : > { %2346 = vpow2.f32 %v1378_v61  ;;  %v1672_v17 = vsel %vm941_vm9, %v1636_v6, 0.0 }
 0x33a   : > { %1593 = vadd.xlane.f32.xlu2 %v1592_v24  ;;  %1513 = vadd.xlane.f32.xlu1 %v1512_v25  ;;  %v1798_v3 = vor.u32 1.1754944e-38, %v1797_v8  ;;  %vm1796_vm3 = vcmp.eq.f32.partialorder %v1795_v20, 8.507059e+37  ;;  %v1351_v25 = vsub.f32 %v3029_v59, %v3472_v19 }
 0x33b   : > { %1750 = vadd.xlane.f32.xlu0 %v1749_v62 }
 0x33c   : > { %v1380_v45 = vmul.f32 1.442695, %v1351_v25 }
 0x33d   : > { %v1490_v54 = vpop.xlane.xlu2 %1489  ;;  %v1727_v22 = vpop.xlane.xlu1 %1726 }
 0x33e   : > { %v2345_v21 = vpop.eup %2344  ;;  %v1407_v12 = vpop.xlane.xlu0 %1406 }
 0x33f   : > { %v1787_v46 = vmul.f32 %v2345_v21, %v1770_v16  ;;  %v1451_v40 = vsel %vm923_vm8, %v1407_v12, 1.0  ;;  %vm1792_vm0 = vweird.f32 %v2345_v21  ;;  %v1435_v16 = vsel %vm941_vm9, %v1397_v29, 0.0  ;;  %v3625_v24 = vpop.eup %2346 }
 0x340   : > { %v1531_v36 = vsel %vm2691_vm7, %v1487_v47, %v1451_v40  ;;  %vm1793_vm2 = vmor %vm1791_vm1, %vm1792_vm0  ;;  %v1637_v12 = vsel %vm2719_vm15, %v3579_v51, 0.0  ;;  %v1398_v59 = vsel %vm923_vm8, %v3625_v24, 0.0  ;;  %v1478_v4 = vsel %vm2691_vm7, %v3625_v24, 0.0 }
 0x341   : > { %v1788_v48 = vsub.f32 1.0, %v1787_v46  ;;  %v1611_v18 = vsel %vm2687_vm6, %v1567_v11, %v1531_v36  ;;  %v1557_v46 = vsel %vm2687_vm6, %v3579_v51, 0.0  ;;  %v1675_v61 = vsel %vm941_vm9, %v1637_v12, 0.0 }
 0x342   : > { %1753 = vadd.xlane.f32.xlu1 %v1752_v58  ;;  %1516 = vadd.xlane.f32.xlu2 %v1515_v53  ;;  %v1595_v53 = vsel %vm941_vm9, %v1557_v46, 0.0  ;;  %v1718_v46 = vsel %vm2715_vm14, %v3625_v24, 0.0 }
 0x343   : > { %v1789_v57 = vmul.f32 %v2345_v21, %v1788_v48  ;;  %1433 = vadd.xlane.f32.xlu0 %v1432_v34  ;;  %v1438_v48 = vsel %vm941_vm9, %v1398_v59, 0.0  ;;  %v1352_v34 = vsub.f32 %v3081_v56, %v3496_v42  ;;  %v1254_v56 = vsel %vm2719_vm15, %v3527_v60, %v3518_v26 }
 0x345   : > { %v1790_v0 = vadd.f32 %v2345_v21, %v1789_v57  ;;  %v1730_v1 = vpop.xlane.xlu2 %1729  ;;  %v1410_v7 = vpop.xlane.xlu1 %1409 }
 0x346   : > { %v1647_v63 = vpop.xlane.xlu0 %1646  ;;  %v1452_v62 = vsel %vm923_vm8, %v1410_v7, 1.0  ;;  %v1558_v7 = vsel %vm2687_vm6, %v3625_v24, 0.0 }
 0x347   : > { %v1794_v28 = vsel %vm1793_vm2, %v2345_v21, %v1790_v0  ;;  %v1691_v47 = vsel %vm2719_vm15, %v1647_v63, %v1611_v18  ;;  %v1532_v14 = vsel %vm2691_vm7, %v1490_v54, %v1452_v62  ;;  %v1638_v18 = vsel %vm2719_vm15, %v3625_v24, 0.0 }
 0x348   : > { %v1799_v11 = vsel %vm1796_vm3, %v1798_v3, %v1794_v28  ;;  %v1771_v15 = vsel %vm2715_vm14, %v1727_v22, %v1691_v47  ;;  %v1382_v28 = vmul.f32 1.442695, %v1352_v34 }
 0x349   : > { %v1800_v33 = vmul.f32 %v3178_v39, %v1799_v11  ;;  %2348 = vrcp.f32 %v1771_v15  ;;  %v1812_v8 = vand.u32 2147483648, %v1771_v15  ;;  %v1810_v20 = vand.u32 2147483647, %v1771_v15 }
 0x34a   : > { %1756 = vadd.xlane.f32.xlu2 %v1755_v37  ;;  %1436 = vadd.xlane.f32.xlu1 %v1435_v16  ;;  %vm1806_vm5 = vweird.f32 %v1771_v15  ;;  %v1337_v37 = vsel %vm2715_vm14, %v3525_v27, %v1254_v56 }
 0x34b   : > { %2026 = vst.msk [vmem:[%s3617_s26] sm:$0xff] %vm941_vm9, %v1800_v33  ;;  %1673 = vadd.xlane.f32.xlu0 %v1672_v17  ;;  %v1813_v42 = vor.u32 1.1754944e-38, %v1812_v8  ;;  %vm1811_vm11 = vcmp.eq.f32.partialorder %v1810_v20, 8.507059e+37  ;;  %v1678_v33 = vsel %vm941_vm9, %v1638_v18, 0.0  ;;  %v1518_v17 = vsel %vm941_vm9, %v1478_v4, 0.0 }
 0x34c   : > { %v1758_v8 = vsel %vm941_vm9, %v1718_v46, 0.0 }
 0x34d   : > { %v1413_v39 = vpop.xlane.xlu2 %1412  ;;  %v1650_v21 = vpop.xlane.xlu1 %1649 }
 0x34e   : > { %v1570_v22 = vpop.xlane.xlu0 %1569  ;;  %v1453_v63 = vsel %vm923_vm8, %v1413_v39, 1.0 }
 0x34f   : > { %v2349_v19 = vpop.eup %2348  ;;  %v1612_v23 = vsel %vm2687_vm6, %v1570_v22, %v1532_v14 }
 0x350   : > { %v1802_v54 = vmul.f32 %v2349_v19, %v1771_v15  ;;  %v1692_v50 = vsel %vm2719_vm15, %v1650_v21, %v1612_v23  ;;  %vm1807_vm4 = vweird.f32 %v2349_v19  ;;  %v1598_v15 = vsel %vm941_vm9, %v1558_v7, 0.0 }
 0x351   : > { %v3650_v40 = vsel %vm2715_vm14, %v1730_v1, %v1692_v50  ;;  %vm1808_vm10 = vmor %vm1806_vm5, %vm1807_vm4 }
 0x352   : > { %v1803_v58 = vsub.f32 1.0, %v1802_v54  ;;  %2350 = vrcp.f32 %v3650_v40  ;;  %1676 = vadd.xlane.f32.xlu1 %v1675_v61  ;;  %1439 = vadd.xlane.f32.xlu2 %v1438_v48  ;;  %v1827_v39 = vand.u32 2147483648, %v3650_v40  ;;  %v1825_v21 = vand.u32 2147483647, %v3650_v40 }
 0x353   : > { %2352 = vpow2.f32 %v1380_v45  ;;  %1596 = vadd.xlane.f32.xlu0 %v1595_v53  ;;  %vm1821_vm13 = vweird.f32 %v3650_v40 }
 0x354   : > { %v1804_v57 = vmul.f32 %v2349_v19, %v1803_v58  ;;  %2354 = vpow2.f32 %v1382_v28  ;;  %v1828_v54 = vor.u32 1.1754944e-38, %v1827_v39  ;;  %vm1826_vm1 = vcmp.eq.f32.partialorder %v1825_v21, 8.507059e+37 }
 0x355   : > { %v1653_v36 = vpop.xlane.xlu2 %1652  ;;  %v1573_v1 = vpop.xlane.xlu1 %1572 }
 0x356   : > { %v1805_v0 = vadd.f32 %v2349_v19, %v1804_v57  ;;  %v1493_v3 = vpop.xlane.xlu0 %1492 }
 0x357   : > { %v1533_v6 = vsel %vm2691_vm7, %v1493_v3, %v1453_v63 }
 0x358   : > { %v2351_v29 = vpop.eup %2350  ;;  %v1809_v47 = vsel %vm1808_vm10, %v2349_v19, %v1805_v0  ;;  %v1613_v62 = vsel %vm2687_vm6, %v1573_v1, %v1533_v6 }
 0x359   : > { %v3675_v11 = vpop.eup %2352  ;;  %v1814_v26 = vsel %vm1811_vm11, %v1813_v42, %v1809_v47  ;;  %v1817_v60 = vmul.f32 %v2351_v29, %v3650_v40  ;;  %vm1822_vm12 = vweird.f32 %v2351_v29  ;;  %v1693_v59 = vsel %vm2719_vm15, %v1653_v36, %v1613_v62 }
 0x35a   : > { %v1815_v16 = vmul.f32 %v3230_v13, %v1814_v26  ;;  %1599 = vadd.xlane.f32.xlu1 %v1598_v15  ;;  %1679 = vadd.xlane.f32.xlu2 %v1678_v33  ;;  %v1559_v27 = vsel %vm2687_vm6, %v3675_v11, 0.0  ;;  %v1353_v13 = vsub.f32 %v3142_v38, %v1337_v37  ;;  %v1479_v45 = vsel %vm2691_vm7, %v3675_v11, 0.0  ;;  %vm1823_vm0 = vmor %vm1821_vm13, %vm1822_vm12  ;;  %v3708_v53 = vpop.eup %2354 }
 0x35b   : > { %v1818_v25 = vsub.f32 1.0, %v1817_v60  ;;  %1519 = vadd.xlane.f32.xlu0 %v1518_v17  ;;  %v1601_v50 = vsel %vm941_vm9, %v1559_v27, 0.0  ;;  %v1521_v58 = vsel %vm941_vm9, %v1479_v45, 0.0  ;;  %v1480_v1 = vsel %vm2691_vm7, %v3708_v53, 0.0 }
 0x35c   : > { %2027 = vst.msk [vmem:[%s3617_s26 + $0x8] sm:$0xff] %vm941_vm9, %v1815_v16  ;;  %v1384_v61 = vmul.f32 1.442695, %v1353_v13  ;;  %v1400_v3 = vsel %vm923_vm8, %v3708_v53, 0.0  ;;  %v1524_v42 = vsel %vm941_vm9, %v1480_v1, 0.0  ;;  %v1639_v13 = vsel %vm2719_vm15, %v3675_v11, 0.0 }
 0x35d   : > { %v1819_v14 = vmul.f32 %v2351_v29, %v1818_v25  ;;  %v1576_v22 = vpop.xlane.xlu2 %1575  ;;  %v1496_v12 = vpop.xlane.xlu1 %1495  ;;  %v1444_v63 = vsel %vm941_vm9, %v1400_v3, 0.0  ;;  %v1640_v25 = vsel %vm2719_vm15, %v3708_v53, 0.0 }
 0x35e   : > { %v1733_v19 = vpop.xlane.xlu0 %1732 }
 0x35f   : > { %v1820_v23 = vadd.f32 %v2351_v29, %v1819_v14  ;;  %v1773_v38 = vsel %vm2715_vm14, %v1733_v19, %v1693_v59  ;;  %v1681_v19 = vsel %vm941_vm9, %v1639_v13, 0.0 }
 0x360   : > { %2356 = vrcp.f32 %v1773_v38  ;;  %v1842_v4 = vand.u32 2147483648, %v1773_v38  ;;  %v1840_v6 = vand.u32 2147483647, %v1773_v38  ;;  %vm1836_vm3 = vweird.f32 %v1773_v38 }
 0x361   : > { %v1824_v48 = vsel %vm1823_vm0, %v2351_v29, %v1820_v23  ;;  %2358 = vpow2.f32 %v1384_v61 }
 0x362   : > { %v1829_v40 = vsel %vm1826_vm1, %v1828_v54, %v1824_v48  ;;  %1602 = vadd.xlane.f32.xlu2 %v1601_v50  ;;  %1522 = vadd.xlane.f32.xlu1 %v1521_v58  ;;  %v1843_v33 = vor.u32 1.1754944e-38, %v1842_v4  ;;  %vm1841_vm5 = vcmp.eq.f32.partialorder %v1840_v6, 8.507059e+37  ;;  %v1560_v58 = vsel %vm2687_vm6, %v3708_v53, 0.0 }
 0x363   : > { %v1830_v34 = vmul.f32 %v3262_v9, %v1829_v40  ;;  %1759 = vadd.xlane.f32.xlu0 %v1758_v8  ;;  %v1399_v9 = vsel %vm923_vm8, %v3675_v11, 0.0  ;;  %v1720_v4 = vsel %vm2715_vm14, %v3708_v53, 0.0 }
 0x364   : > { %v1441_v29 = vsel %vm941_vm9, %v1399_v9, 0.0 }
 0x365   : > { %2028 = vst.msk [vmem:[%s3617_s26 + $0x10] sm:$0xff] %vm941_vm9, %v1830_v34  ;;  %v1499_v57 = vpop.xlane.xlu2 %1498  ;;  %v1736_v36 = vpop.xlane.xlu1 %1735 }
 0x366   : > { %v2357_v20 = vpop.eup %2356  ;;  %v1416_v0 = vpop.xlane.xlu0 %1415 }
 0x367   : > { %v1832_v7 = vmul.f32 %v2357_v20, %v1773_v38  ;;  %v1454_v18 = vsel %vm923_vm8, %v1416_v0, 1.0  ;;  %v3728_v28 = vpop.eup %2358  ;;  %vm1837_vm2 = vweird.f32 %v2357_v20  ;;  %v1604_v0 = vsel %vm941_vm9, %v1560_v58, 0.0 }
 0x368   : > { %v1534_v26 = vsel %vm2691_vm7, %v1496_v12, %v1454_v18  ;;  %vm1838_vm4 = vmor %vm1836_vm3, %vm1837_vm2  ;;  %v1401_v62 = vsel %vm923_vm8, %v3728_v28, 0.0  ;;  %v1684_v12 = vsel %vm941_vm9, %v1640_v25, 0.0  ;;  %v1561_v54 = vsel %vm2687_vm6, %v3728_v28, 0.0 }
 0x369   : > { %v1833_v56 = vsub.f32 1.0, %v1832_v7  ;;  %v1614_v16 = vsel %vm2687_vm6, %v1576_v22, %v1534_v26  ;;  %v1447_v59 = vsel %vm941_vm9, %v1401_v62, 0.0  ;;  %v1641_v50 = vsel %vm2719_vm15, %v3728_v28, 0.0 }
 0x36a   : > { %1525 = vadd.xlane.f32.xlu2 %v1524_v42  ;;  %1445 = vadd.xlane.f32.xlu1 %v1444_v63  ;;  %v1719_v63 = vsel %vm2715_vm14, %v3675_v11, 0.0  ;;  %v1481_v6 = vsel %vm2691_vm7, %v3728_v28, 0.0 }
 0x36b   : > { %v1834_v47 = vmul.f32 %v2357_v20, %v1833_v56  ;;  %1442 = vadd.xlane.f32.xlu0 %v1441_v29  ;;  %v1527_v62 = vsel %vm941_vm9, %v1481_v6, 0.0 }
 0x36d   : > { %v1835_v60 = vadd.f32 %v2357_v20, %v1834_v47  ;;  %v1739_v15 = vpop.xlane.xlu2 %1738  ;;  %v1419_v37 = vpop.xlane.xlu1 %1418 }
 0x36e   : > { %v1656_v17 = vpop.xlane.xlu0 %1655  ;;  %v1455_v45 = vsel %vm923_vm8, %v1419_v37, 1.0 }
 0x36f   : > { %v1839_v39 = vsel %vm1838_vm4, %v2357_v20, %v1835_v60  ;;  %v1694_v27 = vsel %vm2719_vm15, %v1656_v17, %v1614_v16  ;;  %v1535_v38 = vsel %vm2691_vm7, %v1499_v57, %v1455_v45  ;;  %v1607_v57 = vsel %vm941_vm9, %v1561_v54, 0.0 }
 0x370   : > { %v1844_v14 = vsel %vm1841_vm5, %v1843_v33, %v1839_v39  ;;  %v1774_v21 = vsel %vm2715_vm14, %v1736_v36, %v1694_v27  ;;  %v1687_v20 = vsel %vm941_vm9, %v1641_v50, 0.0  ;;  %v1761_v16 = vsel %vm941_vm9, %v1719_v63, 0.0 }
 0x371   : > { %v1845_v22 = vmul.f32 %v3303_v31, %v1844_v14  ;;  %2360 = vrcp.f32 %v1774_v21  ;;  %v1857_v1 = vand.u32 2147483648, %v1774_v21  ;;  %v1855_v7 = vand.u32 2147483647, %v1774_v21 }
 0x372   : > { %1685 = vadd.xlane.f32.xlu1 %v1684_v12  ;;  %1448 = vadd.xlane.f32.xlu2 %v1447_v59  ;;  %vm1851_vm11 = vweird.f32 %v1774_v21  ;;  %v1764_v17 = vsel %vm941_vm9, %v1720_v4, 0.0 }
 0x373   : > { %2029 = vst.msk [vmem:[%s3617_s26 + $0x18] sm:$0xff] %vm941_vm9, %v1845_v22  ;;  %1682 = vadd.xlane.f32.xlu0 %v1681_v19  ;;  %v1858_v29 = vor.u32 1.1754944e-38, %v1857_v1  ;;  %vm1856_vm13 = vcmp.eq.f32.partialorder %v1855_v7, 8.507059e+37 }
 0x375   : > { %v1422_v23 = vpop.xlane.xlu2 %1421  ;;  %v1659_v31 = vpop.xlane.xlu1 %1658 }
 0x376   : > { %v1579_v46 = vpop.xlane.xlu0 %1578  ;;  %v1456_v47 = vsel %vm923_vm8, %v1422_v23, 1.0  ;;  %v1721_v23 = vsel %vm2715_vm14, %v3728_v28, 0.0 }
 0x377   : > { %v2361_v61 = vpop.eup %2360  ;;  %v1615_v48 = vsel %vm2687_vm6, %v1579_v46, %v1535_v38  ;;  %v1767_v54 = vsel %vm941_vm9, %v1721_v23, 0.0 }
 0x378   : > { %v1847_v40 = vmul.f32 %v2361_v61, %v1774_v21  ;;  %v1695_v8 = vsel %vm2719_vm15, %v1659_v31, %v1615_v48  ;;  %vm1852_vm10 = vweird.f32 %v2361_v61 }
 0x379   : > { %v1775_v34 = vsel %vm2715_vm14, %v1739_v15, %v1695_v8  ;;  %vm1853_vm12 = vmor %vm1851_vm11, %vm1852_vm10 }
 0x37a   : > { %v1848_v36 = vsub.f32 1.0, %v1847_v40  ;;  %2362 = vrcp.f32 %v1775_v34  ;;  %1608 = vadd.xlane.f32.xlu1 %v1607_v57  ;;  %1688 = vadd.xlane.f32.xlu2 %v1687_v20  ;;  %v1872_v13 = vand.u32 2147483648, %v1775_v34  ;;  %v1870_v21 = vand.u32 2147483647, %v1775_v34 }
 0x37b   : > { %1605 = vadd.xlane.f32.xlu0 %v1604_v0  ;;  %vm1866_vm1 = vweird.f32 %v1775_v34 }
 0x37c   : > { %v1849_v3 = vmul.f32 %v2361_v61, %v1848_v36  ;;  %v1873_v38 = vor.u32 1.1754944e-38, %v1872_v13  ;;  %vm1871_vm3 = vcmp.eq.f32.partialorder %v1870_v21, 8.507059e+37 }
 0x37d   : > { %v1662_v9 = vpop.xlane.xlu2 %1661  ;;  %v1582_v56 = vpop.xlane.xlu1 %1581 }
 0x37e   : > { %v1850_v18 = vadd.f32 %v2361_v61, %v1849_v3  ;;  %v1502_v42 = vpop.xlane.xlu0 %1501 }
 0x37f   : > { %v1536_v15 = vsel %vm2691_vm7, %v1502_v42, %v1456_v47 }
 0x380   : > { %v2363_v26 = vpop.eup %2362  ;;  %v1854_v60 = vsel %vm1853_vm12, %v2361_v61, %v1850_v18  ;;  %v1616_v27 = vsel %vm2687_vm6, %v1582_v56, %v1536_v15 }
 0x381   : > { %v1859_v33 = vsel %vm1856_vm13, %v1858_v29, %v1854_v60  ;;  %v1862_v37 = vmul.f32 %v2363_v26, %v1775_v34  ;;  %vm1867_vm0 = vweird.f32 %v2363_v26 }
 0x382   : > { %v1860_v25 = vmul.f32 %v3345_v55, %v1859_v33  ;;  %1762 = vadd.xlane.f32.xlu1 %v1761_v16  ;;  %1765 = vadd.xlane.f32.xlu2 %v1764_v17  ;;  %v1696_v55 = vsel %vm2719_vm15, %v1662_v9, %v1616_v27  ;;  %vm1868_vm2 = vmor %vm1866_vm1, %vm1867_vm0 }
 0x383   : > { %v1863_v39 = vsub.f32 1.0, %v1862_v37  ;;  %1528 = vadd.xlane.f32.xlu0 %v1527_v62 }
 0x384   : > { %2030 = vst.msk [vmem:[%s3617_s26 + $0x20] sm:$0xff] %vm941_vm9, %v1860_v25 }
 0x385   : > { %v1864_v14 = vmul.f32 %v2363_v26, %v1863_v39  ;;  %v1585_v22 = vpop.xlane.xlu2 %1584  ;;  %v1505_v12 = vpop.xlane.xlu1 %1504 }
 0x386   : > { %v1742_v59 = vpop.xlane.xlu0 %1741 }
 0x387   : > { %v1865_v19 = vadd.f32 %v2363_v26, %v1864_v14  ;;  %v1776_v45 = vsel %vm2715_vm14, %v1742_v59, %v1696_v55 }
 0x388   : > { %2364 = vrcp.f32 %v1776_v45  ;;  %v1887_v20 = vand.u32 2147483648, %v1776_v45  ;;  %v1885_v0 = vand.u32 2147483647, %v1776_v45  ;;  %vm1881_vm5 = vweird.f32 %v1776_v45 }
 0x389   : > { %v1869_v31 = vsel %vm1868_vm2, %v2363_v26, %v1865_v19 }
 0x38a   : > { %v1874_v46 = vsel %vm1871_vm3, %v1873_v38, %v1869_v31  ;;  %v1888_v7 = vor.u32 1.1754944e-38, %v1887_v20  ;;  %vm1886_vm11 = vcmp.eq.f32.partialorder %v1885_v0, 8.507059e+37 }
 0x38b   : > { %v1875_v50 = vmul.f32 %v3369_v49, %v1874_v46  ;;  %1768 = vadd.xlane.f32.xlu0 %v1767_v54 }
 0x38d   : > { %2031 = vst.msk [vmem:[%s3617_s26 + $0x28] sm:$0xff] %vm941_vm9, %v1875_v50  ;;  %v1508_v61 = vpop.xlane.xlu2 %1507  ;;  %v1745_v58 = vpop.xlane.xlu1 %1744 }
 0x38e   : > { %v2365_v48 = vpop.eup %2364  ;;  %v1425_v40 = vpop.xlane.xlu0 %1424 }
 0x38f   : > { %v1877_v8 = vmul.f32 %v2365_v48, %v1776_v45  ;;  %v1457_v34 = vsel %vm923_vm8, %v1425_v40, 1.0  ;;  %vm1882_vm4 = vweird.f32 %v2365_v48 }
 0x390   : > { %v1537_v1 = vsel %vm2691_vm7, %v1505_v12, %v1457_v34  ;;  %vm1883_vm10 = vmor %vm1881_vm5, %vm1882_vm4 }
 0x391   : > { %v1878_v57 = vsub.f32 1.0, %v1877_v8  ;;  %v1617_v18 = vsel %vm2687_vm6, %v1585_v22, %v1537_v1 }
 0x393   : > { %v1879_v36 = vmul.f32 %v2365_v48, %v1878_v57 }
 0x395   : > { %v1880_v49 = vadd.f32 %v2365_v48, %v1879_v36  ;;  %v1748_v3 = vpop.xlane.xlu2 %1747  ;;  %v1428_v9 = vpop.xlane.xlu1 %1427 }
 0x396   : > { %v1665_v56 = vpop.xlane.xlu0 %1664  ;;  %v1458_v6 = vsel %vm923_vm8, %v1428_v9, 1.0 }
 0x397   : > { %v1884_v42 = vsel %vm1883_vm10, %v2365_v48, %v1880_v49  ;;  %v1697_v63 = vsel %vm2719_vm15, %v1665_v56, %v1617_v18  ;;  %v1538_v60 = vsel %vm2691_vm7, %v1508_v61, %v1458_v6 }
 0x398   : > { %v1889_v4 = vsel %vm1886_vm11, %v1888_v7, %v1884_v42  ;;  %v1777_v29 = vsel %vm2715_vm14, %v1745_v58, %v1697_v63 }
 0x399   : > { %v1890_v47 = vmul.f32 %v3411_v2, %v1889_v4  ;;  %2366 = vrcp.f32 %v1777_v29  ;;  %v1902_v39 = vand.u32 2147483648, %v1777_v29  ;;  %v1900_v13 = vand.u32 2147483647, %v1777_v29 }
 0x39a   : > { %vm1896_vm13 = vweird.f32 %v1777_v29 }
 0x39b   : > { %2032 = vst.msk [vmem:[%s3617_s26 + $0x30] sm:$0xff] %vm941_vm9, %v1890_v47  ;;  %v1903_v55 = vor.u32 1.1754944e-38, %v1902_v39  ;;  %vm1901_vm1 = vcmp.eq.f32.partialorder %v1900_v13, 8.507059e+37 }
 0x39d   : > { %v1431_v26 = vpop.xlane.xlu2 %1430  ;;  %v1668_v15 = vpop.xlane.xlu1 %1667 }
 0x39e   : > { %v1588_v33 = vpop.xlane.xlu0 %1587  ;;  %v1459_v59 = vsel %vm923_vm8, %v1431_v26, 1.0 }
 0x39f   : > { %v2367_v37 = vpop.eup %2366  ;;  %v1618_v16 = vsel %vm2687_vm6, %v1588_v33, %v1538_v60 }
 0x3a0   : > { %v1892_v17 = vmul.f32 %v2367_v37, %v1777_v29  ;;  %v1698_v2 = vsel %vm2719_vm15, %v1668_v15, %v1618_v16  ;;  %vm1897_vm12 = vweird.f32 %v2367_v37 }
 0x3a1   : > { %v1778_v25 = vsel %vm2715_vm14, %v1748_v3, %v1698_v2  ;;  %vm1898_vm0 = vmor %vm1896_vm13, %vm1897_vm12 }
 0x3a2   : > { %v1893_v62 = vsub.f32 1.0, %v1892_v17  ;;  %2368 = vrcp.f32 %v1778_v25  ;;  %v1917_v61 = vand.u32 2147483648, %v1778_v25  ;;  %v1915_v58 = vand.u32 2147483647, %v1778_v25 }
 0x3a3   : > { %vm1911_vm3 = vweird.f32 %v1778_v25 }
 0x3a4   : > { %v1894_v27 = vmul.f32 %v2367_v37, %v1893_v62  ;;  %v1918_v36 = vor.u32 1.1754944e-38, %v1917_v61  ;;  %vm1916_vm5 = vcmp.eq.f32.partialorder %v1915_v58, 8.507059e+37 }
 0x3a5   : > { %v1671_v14 = vpop.xlane.xlu2 %1670  ;;  %v1591_v22 = vpop.xlane.xlu1 %1590 }
 0x3a6   : > { %v1895_v21 = vadd.f32 %v2367_v37, %v1894_v27  ;;  %v1511_v12 = vpop.xlane.xlu0 %1510 }
 0x3a7   : > { %v1539_v23 = vsel %vm2691_vm7, %v1511_v12, %v1459_v59 }
 0x3a8   : > { %v2369_v19 = vpop.eup %2368  ;;  %v1899_v45 = vsel %vm1898_vm0, %v2367_v37, %v1895_v21  ;;  %v1619_v50 = vsel %vm2687_vm6, %v1591_v22, %v1539_v23 }
 0x3a9   : > { %v1904_v38 = vsel %vm1901_vm1, %v1903_v55, %v1899_v45  ;;  %v1907_v31 = vmul.f32 %v2369_v19, %v1778_v25  ;;  %vm1912_vm2 = vweird.f32 %v2369_v19  ;;  %v1699_v34 = vsel %vm2719_vm15, %v1671_v14, %v1619_v50 }
 0x3aa   : > { %v1905_v46 = vmul.f32 %v3453_v41, %v1904_v38  ;;  %vm1913_vm4 = vmor %vm1911_vm3, %vm1912_vm2 }
 0x3ab   : > { %v1908_v54 = vsub.f32 1.0, %v1907_v31 }
 0x3ac   : > { %2033 = vst.msk [vmem:[%s3617_s26 + $0x38] sm:$0xff] %vm941_vm9, %v1905_v46 }
 0x3ad   : > { %v1909_v48 = vmul.f32 %v2369_v19, %v1908_v54  ;;  %v1594_v40 = vpop.xlane.xlu2 %1593  ;;  %v1514_v8 = vpop.xlane.xlu1 %1513 }
 0x3ae   : > { %v1751_v57 = vpop.xlane.xlu0 %1750 }
 0x3af   : > { %v1910_v20 = vadd.f32 %v2369_v19, %v1909_v48  ;;  %v1779_v41 = vsel %vm2715_vm14, %v1751_v57, %v1699_v34 }
 0x3b0   : > { %2370 = vrcp.f32 %v1779_v41  ;;  %v1932_v4 = vand.u32 2147483648, %v1779_v41  ;;  %v1930_v47 = vand.u32 2147483647, %v1779_v41  ;;  %vm1926_vm11 = vweird.f32 %v1779_v41 }
 0x3b1   : > { %v1914_v0 = vsel %vm1913_vm4, %v2369_v19, %v1910_v20 }
 0x3b2   : > { %v1919_v1 = vsel %vm1916_vm5, %v1918_v36, %v1914_v0  ;;  %v1933_v60 = vor.u32 1.1754944e-38, %v1932_v4  ;;  %vm1931_vm13 = vcmp.eq.f32.partialorder %v1930_v47, 8.507059e+37 }
 0x3b3   : > { %v1920_v49 = vmul.f32 %v3477_v30, %v1919_v1 }
 0x3b5   : > { %2034 = vst.msk [vmem:[%s3617_s26 + $0x40] sm:$0xff] %vm941_vm9, %v1920_v49  ;;  %v1517_v3 = vpop.xlane.xlu2 %1516  ;;  %v1754_v9 = vpop.xlane.xlu1 %1753 }
 0x3b6   : > { %v2371_v7 = vpop.eup %2370  ;;  %v1434_v18 = vpop.xlane.xlu0 %1433 }
 0x3b7   : > { %v1922_v56 = vmul.f32 %v2371_v7, %v1779_v41  ;;  %v1460_v42 = vsel %vm923_vm8, %v1434_v18, 1.0  ;;  %vm1927_vm10 = vweird.f32 %v2371_v7 }
 0x3b8   : > { %v1540_v6 = vsel %vm2691_vm7, %v1514_v8, %v1460_v42  ;;  %vm1928_vm12 = vmor %vm1926_vm11, %vm1927_vm10 }
 0x3b9   : > { %v1923_v63 = vsub.f32 1.0, %v1922_v56  ;;  %v1620_v33 = vsel %vm2687_vm6, %v1594_v40, %v1540_v6 }
 0x3bb   : > { %v1924_v29 = vmul.f32 %v2371_v7, %v1923_v63 }
 0x3bd   : > { %v1925_v30 = vadd.f32 %v2371_v7, %v1924_v29  ;;  %v1757_v26 = vpop.xlane.xlu2 %1756  ;;  %v1437_v15 = vpop.xlane.xlu1 %1436 }
 0x3be   : > { %v1674_v37 = vpop.xlane.xlu0 %1673  ;;  %v1461_v39 = vsel %vm923_vm8, %v1437_v15, 1.0 }
 0x3bf   : > { %v1929_v16 = vsel %vm1928_vm12, %v2371_v7, %v1925_v30  ;;  %v1700_v17 = vsel %vm2719_vm15, %v1674_v37, %v1620_v33  ;;  %v1541_v13 = vsel %vm2691_vm7, %v1517_v3, %v1461_v39 }
 0x3c0   : > { %v1934_v2 = vsel %vm1931_vm13, %v1933_v60, %v1929_v16  ;;  %v1780_v25 = vsel %vm2715_vm14, %v1754_v9, %v1700_v17 }
 0x3c1   : > { %v1935_v62 = vmul.f32 %v3521_v52, %v1934_v2  ;;  %2372 = vrcp.f32 %v1780_v25  ;;  %v1947_v45 = vand.u32 2147483648, %v1780_v25  ;;  %v1945_v38 = vand.u32 2147483647, %v1780_v25 }
 0x3c2   : > { %vm1941_vm1 = vweird.f32 %v1780_v25 }
 0x3c3   : > { %2035 = vst.msk [vmem:[%s3617_s26 + $0x48] sm:$0xff] %vm941_vm9, %v1935_v62  ;;  %v1948_v61 = vor.u32 1.1754944e-38, %v1947_v45  ;;  %vm1946_vm3 = vcmp.eq.f32.partialorder %v1945_v38, 8.507059e+37 }
 0x3c5   : > { %v1440_v27 = vpop.xlane.xlu2 %1439  ;;  %v1677_v14 = vpop.xlane.xlu1 %1676 }
 0x3c6   : > { %v1597_v21 = vpop.xlane.xlu0 %1596  ;;  %v1462_v48 = vsel %vm923_vm8, %v1440_v27, 1.0 }
 0x3c7   : > { %v2373_v22 = vpop.eup %2372  ;;  %v1621_v12 = vsel %vm2687_vm6, %v1597_v21, %v1541_v13 }
 0x3c8   : > { %v1937_v55 = vmul.f32 %v2373_v22, %v1780_v25  ;;  %v1701_v52 = vsel %vm2719_vm15, %v1677_v14, %v1621_v12  ;;  %vm1942_vm0 = vweird.f32 %v2373_v22 }
 0x3c9   : > { %v1781_v59 = vsel %vm2715_vm14, %v1757_v26, %v1701_v52  ;;  %vm1943_vm2 = vmor %vm1941_vm1, %vm1942_vm0 }
 0x3ca   : > { %v1938_v19 = vsub.f32 1.0, %v1937_v55  ;;  %2374 = vrcp.f32 %v1781_v59  ;;  %v1962_v0 = vand.u32 2147483648, %v1781_v59  ;;  %v1960_v49 = vand.u32 2147483647, %v1781_v59 }
 0x3cb   : > { %vm1956_vm5 = vweird.f32 %v1781_v59 }
 0x3cc   : > { %v1939_v23 = vmul.f32 %v2373_v22, %v1938_v19  ;;  %v1963_v42 = vor.u32 1.1754944e-38, %v1962_v0  ;;  %vm1961_vm11 = vcmp.eq.f32.partialorder %v1960_v49, 8.507059e+37 }
 0x3cd   : > { %v1680_v31 = vpop.xlane.xlu2 %1679  ;;  %v1600_v54 = vpop.xlane.xlu1 %1599 }
 0x3ce   : > { %v1940_v46 = vadd.f32 %v2373_v22, %v1939_v23  ;;  %v1520_v50 = vpop.xlane.xlu0 %1519 }
 0x3cf   : > { %v1542_v8 = vsel %vm2691_vm7, %v1520_v50, %v1462_v48 }
 0x3d0   : > { %v2375_v58 = vpop.eup %2374  ;;  %v1944_v40 = vsel %vm1943_vm2, %v2373_v22, %v1940_v46  ;;  %v1622_v36 = vsel %vm2687_vm6, %v1600_v54, %v1542_v8 }
 0x3d1   : > { %v1949_v34 = vsel %vm1946_vm3, %v1948_v61, %v1944_v40  ;;  %v1952_v57 = vmul.f32 %v2375_v58, %v1781_v59  ;;  %vm1957_vm4 = vweird.f32 %v2375_v58  ;;  %v1702_v9 = vsel %vm2719_vm15, %v1680_v31, %v1622_v36 }
 0x3d2   : > { %v1950_v20 = vmul.f32 %v3559_v5, %v1949_v34  ;;  %vm1958_vm10 = vmor %vm1956_vm5, %vm1957_vm4 }
 0x3d3   : > { %v1953_v41 = vsub.f32 1.0, %v1952_v57 }
 0x3d4   : > { %2036 = vst.msk [vmem:[%s3617_s26 + $0x50] sm:$0xff] %vm941_vm9, %v1950_v20 }
 0x3d5   : > { %v1954_v1 = vmul.f32 %v2375_v58, %v1953_v41  ;;  %v1603_v3 = vpop.xlane.xlu2 %1602  ;;  %v1523_v7 = vpop.xlane.xlu1 %1522 }
 0x3d6   : > { %v1760_v18 = vpop.xlane.xlu0 %1759 }
 0x3d7   : > { %v1955_v56 = vadd.f32 %v2375_v58, %v1954_v1  ;;  %v1782_v5 = vsel %vm2715_vm14, %v1760_v18, %v1702_v9 }
 0x3d8   : > { %2376 = vrcp.f32 %v1782_v5  ;;  %v1977_v33 = vand.u32 2147483648, %v1782_v5  ;;  %v1975_v16 = vand.u32 2147483647, %v1782_v5  ;;  %vm1971_vm13 = vweird.f32 %v1782_v5 }
 0x3d9   : > { %v1959_v63 = vsel %vm1958_vm10, %v2375_v58, %v1955_v56 }
 0x3da   : > { %v1964_v4 = vsel %vm1961_vm11, %v1963_v42, %v1959_v63  ;;  %v1978_v25 = vor.u32 1.1754944e-38, %v1977_v33  ;;  %vm1976_vm1 = vcmp.eq.f32.partialorder %v1975_v16, 8.507059e+37 }
 0x3db   : > { %v1965_v29 = vmul.f32 %v3579_v51, %v1964_v4 }
 0x3dd   : > { %2037 = vst.msk [vmem:[%s3617_s26 + $0x58] sm:$0xff] %vm941_vm9, %v1965_v29  ;;  %v1526_v47 = vpop.xlane.xlu2 %1525  ;;  %v1446_v30 = vpop.xlane.xlu1 %1445 }
 0x3de   : > { %v2377_v6 = vpop.eup %2376  ;;  %v1443_v26 = vpop.xlane.xlu0 %1442  ;;  %v1464_v21 = vsel %vm923_vm8, %v1446_v30, 1.0 }
 0x3df   : > { %v1967_v60 = vmul.f32 %v2377_v6, %v1782_v5  ;;  %vm1972_vm12 = vweird.f32 %v2377_v6  ;;  %v1463_v55 = vsel %vm923_vm8, %v1443_v26, 1.0  ;;  %v1544_v52 = vsel %vm2691_vm7, %v1526_v47, %v1464_v21 }
 0x3e0   : > { %vm1973_vm0 = vmor %vm1971_vm13, %vm1972_vm12  ;;  %v1543_v59 = vsel %vm2691_vm7, %v1523_v7, %v1463_v55 }
 0x3e1   : > { %v1968_v15 = vsub.f32 1.0, %v1967_v60  ;;  %v1623_v19 = vsel %vm2687_vm6, %v1603_v3, %v1543_v59 }
 0x3e3   : > { %v1969_v37 = vmul.f32 %v2377_v6, %v1968_v15 }
 0x3e5   : > { %v1970_v17 = vadd.f32 %v2377_v6, %v1969_v37  ;;  %v1449_v2 = vpop.xlane.xlu2 %1448  ;;  %v1686_v62 = vpop.xlane.xlu1 %1685 }
 0x3e6   : > { %v1683_v51 = vpop.xlane.xlu0 %1682  ;;  %v1465_v61 = vsel %vm923_vm8, %v1449_v2, 1.0 }
 0x3e7   : > { %v1974_v39 = vsel %vm1973_vm0, %v2377_v6, %v1970_v17  ;;  %v1703_v38 = vsel %vm2719_vm15, %v1683_v51, %v1623_v19 }
 0x3e8   : > { %v1979_v27 = vsel %vm1976_vm1, %v1978_v25, %v1974_v39 }
 0x3e9   : > { %v1980_v13 = vmul.f32 %v3625_v24, %v1979_v27 }
 0x3eb   : > { %2038 = vst.msk [vmem:[%s3617_s26 + $0x60] sm:$0xff] %vm941_vm9, %v1980_v13 }
 0x3ed   : > { %v1689_v14 = vpop.xlane.xlu2 %1688  ;;  %v1609_v22 = vpop.xlane.xlu1 %1608 }
 0x3ee   : > { %v1606_v12 = vpop.xlane.xlu0 %1605 }
 0x3ef   : > { %v1624_v24 = vsel %vm2687_vm6, %v1606_v12, %v1544_v52 }
 0x3f0   : > { %v1704_v23 = vsel %vm2719_vm15, %v1686_v62, %v1624_v24 }
 0x3f5   : > { %v1766_v45 = vpop.xlane.xlu2 %1765  ;;  %v1763_v31 = vpop.xlane.xlu1 %1762 }
 0x3f6   : > { %v1784_v46 = vsel %vm2715_vm14, %v1766_v45, %v1704_v23  ;;  %v1529_v54 = vpop.xlane.xlu0 %1528  ;;  %v1783_v50 = vsel %vm2715_vm14, %v1763_v31, %v1703_v38 }
 0x3f7   : > { %2378 = vrcp.f32 %v1784_v46  ;;  %v1545_v48 = vsel %vm2691_vm7, %v1529_v54, %v1465_v61  ;;  %v2007_v1 = vand.u32 2147483648, %v1784_v46  ;;  %v1992_v35 = vand.u32 2147483648, %v1783_v50 }
 0x3f8   : > { %2380 = vrcp.f32 %v1783_v50  ;;  %v1625_v58 = vsel %vm2687_vm6, %v1609_v22, %v1545_v48  ;;  %v2005_v10 = vand.u32 2147483647, %v1784_v46  ;;  %v1990_v7 = vand.u32 2147483647, %v1783_v50 }
 0x3f9   : > { %v1705_v57 = vsel %vm2719_vm15, %v1689_v14, %v1625_v58  ;;  %vm2001_vm8 = vweird.f32 %v1784_v46  ;;  %vm1986_vm15 = vweird.f32 %v1783_v50  ;;  %v2008_v18 = vor.u32 1.1754944e-38, %v2007_v1 }
 0x3fa   : > { %v1993_v56 = vor.u32 1.1754944e-38, %v1992_v35  ;;  %vm2006_vm3 = vcmp.eq.f32.partialorder %v2005_v10, 8.507059e+37  ;;  %vm1991_vm4 = vcmp.eq.f32.partialorder %v1990_v7, 8.507059e+37 }
 0x3fd   : > { %v2379_v40 = vpop.eup %2378 }
 0x3fe   : > { %v2381_v8 = vpop.eup %2380  ;;  %v1997_v34 = vmul.f32 %v2379_v40, %v1784_v46  ;;  %v1769_v20 = vpop.xlane.xlu0 %1768  ;;  %vm2002_vm7 = vweird.f32 %v2379_v40 }
 0x3ff   : > { %v1982_v41 = vmul.f32 %v2381_v8, %v1783_v50  ;;  %v1785_v36 = vsel %vm2715_vm14, %v1769_v20, %v1705_v57  ;;  %vm1987_vm6 = vweird.f32 %v2381_v8  ;;  %vm2003_vm2 = vmor %vm2001_vm8, %vm2002_vm7 }
 0x400   : > { %v1998_v32 = vsub.f32 1.0, %v1997_v34  ;;  %2382 = vrcp.f32 %v1785_v36  ;;  %vm1988_vm14 = vmor %vm1986_vm15, %vm1987_vm6  ;;  %v2022_v26 = vand.u32 2147483648, %v1785_v36  ;;  %v2020_v15 = vand.u32 2147483647, %v1785_v36 }
 0x401   : > { %v1983_v0 = vsub.f32 1.0, %v1982_v41  ;;  %vm2016_vm10 = vweird.f32 %v1785_v36 }
 0x402   : > { %v1999_v49 = vmul.f32 %v2379_v40, %v1998_v32  ;;  %v2023_v37 = vor.u32 1.1754944e-38, %v2022_v26  ;;  %vm2021_vm12 = vcmp.eq.f32.partialorder %v2020_v15, 8.507059e+37 }
 0x403   : > { %v1984_v3 = vmul.f32 %v2381_v8, %v1983_v0 }
 0x404   : > { %v2000_v9 = vadd.f32 %v2379_v40, %v1999_v49 }
 0x405   : > { %v1985_v44 = vadd.f32 %v2381_v8, %v1984_v3 }
 0x406   : > { %v2383_v43 = vpop.eup %2382  ;;  %v2004_v5 = vsel %vm2003_vm2, %v2379_v40, %v2000_v9 }
 0x407   : > { %v1989_v42 = vsel %vm1988_vm14, %v2381_v8, %v1985_v44  ;;  %v2009_v63 = vsel %vm2006_vm3, %v2008_v18, %v2004_v5  ;;  %v2012_v4 = vmul.f32 %v2383_v43, %v1785_v36  ;;  %vm2017_vm5 = vweird.f32 %v2383_v43 }
 0x408   : > { %v1994_v29 = vsel %vm1991_vm4, %v1993_v56, %v1989_v42  ;;  %v2010_v47 = vmul.f32 %v3708_v53, %v2009_v63  ;;  %vm2018_vm11 = vmor %vm2016_vm10, %vm2017_vm5 }
 0x409   : > { %v1995_v6 = vmul.f32 %v3675_v11, %v1994_v29  ;;  %v2013_v30 = vsub.f32 1.0, %v2012_v4 }
 0x40a   : > { %2040 = vst.msk [vmem:[%s3617_s26 + $0x70] sm:$0xff] %vm941_vm9, %v2010_v47 }
 0x40b   : > { %2039 = vst.msk [vmem:[%s3617_s26 + $0x68] sm:$0xff] %vm941_vm9, %v1995_v6  ;;  %v2014_v60 = vmul.f32 %v2383_v43, %v2013_v30 }
 0x40d   : > { %v2015_v33 = vadd.f32 %v2383_v43, %v2014_v60 }
 0x40f   : > { %v2019_v16 = vsel %vm2018_vm11, %v2383_v43, %v2015_v33 }
 0x410   : > { %v2024_v17 = vsel %vm2021_vm12, %v2023_v37, %v2019_v16 }
 0x411   : > { %v2025_v53 = vmul.f32 %v3728_v28, %v2024_v17 }
 0x413   : > { %2041 = vst.msk [vmem:[%s3617_s26 + $0x78] sm:$0xff] %vm941_vm9, %v2025_v53 }
 0x414 PF: > { %s17_s24 = sadd.s32 1, %s2390_s24  }
 0x415   : > { %p14_p4 = scmp.ge.s32.totalorder %s17_s24, 4  }
 0x417   :  { %16 = sbr.rel (!%p14_p4) target bundleno = 1 (0x1), region = 78 }

</bundles_post_ra>
